<compile_context>
chip_gen: v7x
topology: tpu7x:2x2x1
jax: 0.10.0
libtpu: 0.0.40
codegen_flags: <defaults>
</compile_context>

<pallas_src>
import functools
import math

import jax
import jax.numpy as jnp
from jax import lax
from jax.experimental import pallas as pl
from jax.experimental.pallas import tpu as pltpu

# ----------------------------- small config ---------------------------------
SEQ = 64          # sequence length (tokens)
BATCH = 2         # batch size
D_MODEL = 128     # embedding dim (lane-dense)
NHEAD = 4         # attention heads -> head_dim = 32
DIM_FF = 256      # feed-forward hidden dim
LN_EPS = 1e-5     # PyTorch LayerNorm default


# ------------------------------ kernel helpers -------------------------------
def _gelu(x):
    # TODO(synk): PyTorch F.gelu defaults to the exact erf formulation; the
    # tanh approximation is used here (erf has no guaranteed Mosaic lowering).
    c = math.sqrt(2.0 / math.pi)
    return 0.5 * x * (1.0 + jnp.tanh(c * (x + 0.044715 * x * x * x)))


def _layernorm(x, gamma, beta):
    mu = jnp.mean(x, axis=-1, keepdims=True)
    xc = x - mu
    var = jnp.mean(xc * xc, axis=-1, keepdims=True)
    return xc * lax.rsqrt(var + LN_EPS) * gamma + beta


# ------------------------------ fused kernel ---------------------------------
def _encoder_layer_kernel(src_ref, pos_ref,
                          wqk_ref, wv_ref, wo_ref, w1_ref, w2_ref,
                          vec_ref,
                          out_ref,
                          *, d_model, nhead):
    D = d_model
    H = nhead
    dh = D // H
    S = src_ref.shape[0]
    B = src_ref.shape[1] // D        # batches folded into this grid step
    F = w1_ref.shape[1]
    bf16 = jnp.bfloat16

    # ---- unpack the packed bias / LayerNorm vector (128-lane-aligned slices) ----
    off = 0

    def take(n):
        nonlocal off
        piece = vec_ref[:, off:off + n]
        off += n
        return piece

    b_qk = take(2 * D)    # Q half already scaled by 1/sqrt(head_dim)
    b_v = take(D)
    b_o = take(D)
    b1 = take(F)
    b2 = take(D)
    g1 = take(D)
    be1 = take(D)
    g2 = take(D)
    be2 = take(D)

    # ---- gather per-batch (S, D) slabs (lane-aligned) and fold batch into M ----
    xs = [src_ref[:, b * D:(b + 1) * D] for b in range(B)]
    ps = [pos_ref[:, b * D:(b + 1) * D] for b in range(B)]
    x = xs[0] if B == 1 else jnp.concatenate(xs, axis=0)        # (B*S, D) f32
    p = ps[0] if B == 1 else jnp.concatenate(ps, axis=0)
    qk_in = (x + p).astype(bf16)                                 # q = k = src + pos
    x_b = x.astype(bf16)

    # ---- fused Q/K projection and V projection: M = B*S wide MXU matmuls ----
    qk = jnp.dot(qk_in, wqk_ref[...],
                 preferred_element_type=jnp.float32) + b_qk      # (B*S, 2D)
    v = jnp.dot(x_b, wv_ref[...],
                preferred_element_type=jnp.float32) + b_v        # (B*S, D)

    # ---- attention: per (batch, head); out-projection accumulated per head ----
    rows_out = []
    for b in range(B):
        r0 = b * S
        acc = x[r0:r0 + S, :] + b_o          # residual + out-proj bias, f32 (S, D)
        for h in range(H):
            lo = h * dh
            qh = qk[r0:r0 + S, lo:lo + dh].astype(bf16)             # (S, dh)
            kh = qk[r0:r0 + S, D + lo:D + lo + dh].astype(bf16)     # (S, dh)
            vh = v[r0:r0 + S, lo:lo + dh].astype(bf16)              # (S, dh)
            # q @ k^T without an explicit transpose (contract on last dims).
            s = lax.dot_general(qh, kh, (((1,), (1,)), ((), ())),
                                preferred_element_type=jnp.float32)  # (S, S)
            s = s - jnp.max(s, axis=-1, keepdims=True)
            e = jnp.exp(s)
            a = e * pl.reciprocal(jnp.sum(e, axis=-1, keepdims=True), approx=True)
            oh = jnp.dot(a.astype(bf16), vh,
                         preferred_element_type=jnp.float32)         # (S, dh)
            # Fold directly into the output projection (no attn scratch).
            acc = acc + jnp.dot(oh.astype(bf16), wo_ref[lo:lo + dh, :],
                                preferred_element_type=jnp.float32)  # (S, D)
        rows_out.append(acc)
    attn_res = rows_out[0] if B == 1 else jnp.concatenate(rows_out, axis=0)

    # ---- LayerNorm1, FFN (gelu), residual, LayerNorm2 (dropout = identity) ----
    h1 = _layernorm(attn_res, g1, be1)                               # (B*S, D)
    ff = jnp.dot(h1.astype(bf16), w1_ref[...],
                 preferred_element_type=jnp.float32) + b1            # (B*S, F)
    ff = _gelu(ff)
    ff2 = jnp.dot(ff.astype(bf16), w2_ref[...],
                  preferred_element_type=jnp.float32) + b2           # (B*S, D)
    out = _layernorm(h1 + ff2, g2, be2)

    # ---- scatter back to the lane-blocked (S, B*D) output (lane-aligned) ----
    for b in range(B):
        out_ref[:, b * D:(b + 1) * D] = out[b * S:(b + 1) * S, :]


# --------------------------- one-time weight prep ----------------------------
def prepare_params(params):
    """Hoisted, one-time weight preprocessing (NOT re-run per forward call)."""
    D = D_MODEL
    dh = D // NHEAD
    scale = 1.0 / math.sqrt(dh)

    wq = params["in_proj_w"][:D]
    wk = params["in_proj_w"][D:2 * D]
    wv = params["in_proj_w"][2 * D:]
    bq = params["in_proj_b"][:D]
    bk = params["in_proj_b"][D:2 * D]
    bv = params["in_proj_b"][2 * D:]

    w_qk = jnp.concatenate([wq.T * scale, wk.T], axis=1).astype(jnp.bfloat16)  # (D, 2D)
    w_v = wv.T.astype(jnp.bfloat16)                                            # (D, D)
    w_o = params["out_proj_w"].T.astype(jnp.bfloat16)                          # (D, D)
    w1 = params["linear1_w"].T.astype(jnp.bfloat16)                            # (D, F)
    w2 = params["linear2_w"].T.astype(jnp.bfloat16)                            # (F, D)

    # Pack all tiny 1-D params into one lane-dense vector (kernel slice order!)
    vec = jnp.concatenate([
        bq * scale, bk,                               # fused QK bias (2D)
        bv,                                           # V bias        (D)
        params["out_proj_b"],                         # out-proj bias (D)
        params["linear1_b"],                          # FFN bias 1    (F)
        params["linear2_b"],                          # FFN bias 2    (D)
        params["norm1_w"], params["norm1_b"],         # LN1           (2D)
        params["norm2_w"], params["norm2_b"],         # LN2           (2D)
    ]).astype(jnp.float32)[None, :]                                            # (1, 1408)

    return {"w_qk": w_qk, "w_v": w_v, "w_o": w_o, "w1": w1, "w2": w2, "vec": vec}


# ------------------------------ python wrapper -------------------------------
def _full_spec(arr):
    nd = arr.ndim
    return pl.BlockSpec(arr.shape, lambda i, _nd=nd: (0,) * _nd)


def _num_tensorcores_per_device():
    """Best-effort: 1 TC per device on v2/v3/v5e/v6e, 2 TCs on v4/v5p/v7x."""
    kind = jax.devices()[0].device_kind.lower()
    if any(tag in kind for tag in ("lite", "v5e", "v6e", "v2", "v3")):
        return 1
    return 2


def transformer_encoder_layer(src, pos, prepped):
    """src, pos: (S, B, D) — PyTorch (seq, batch, embed) layout. Returns same."""
    S, B, D = src.shape

    # Free, contiguous views (no transpose): batch b -> lanes [b*D, (b+1)*D).
    src2d = jnp.reshape(src, (S, B * D))
    pos2d = jnp.zeros_like(src2d) if pos is None else jnp.reshape(pos, (S, B * D))

    # Fold all batches into one M = B*S slab on single-TC chips; keep a 2-way
    # "parallel" batch split (one per TensorCore) on megacore chips (v4/v5p/v7x).
    n_steps = 2 if (_num_tensorcores_per_device() == 2 and B >= 2 and B % 2 == 0) else 1
    bpd = B // n_steps                                 # batches per grid step

    act_spec = pl.BlockSpec((S, bpd * D), lambda i: (0, i))
    weights = (prepped["w_qk"], prepped["w_v"], prepped["w_o"],
               prepped["w1"], prepped["w2"], prepped["vec"])

    out2d = pl.pallas_call(
        functools.partial(_encoder_layer_kernel, d_model=D, nhead=NHEAD),
        out_shape=jax.ShapeDtypeStruct((S, B * D), jnp.float32),
        grid=(n_steps,),
        in_specs=[act_spec, act_spec] + [_full_spec(w) for w in weights],
        out_specs=act_spec,
        compiler_params=pltpu.CompilerParams(
            dimension_semantics=("parallel",)),
    )(src2d, pos2d, *weights)

    return jnp.reshape(out2d, (S, B, D))


# ------------------------------ parameters -----------------------------------
def init_params(key):
    ks = jax.random.split(key, 8)

    def w(k, shape, fan_in):
        return jax.random.normal(k, shape, jnp.float32) * (1.0 / math.sqrt(fan_in))

    return {
        "in_proj_w": w(ks[0], (3 * D_MODEL, D_MODEL), D_MODEL),
        "in_proj_b": w(ks[1], (3 * D_MODEL,), D_MODEL),
        "out_proj_w": w(ks[2], (D_MODEL, D_MODEL), D_MODEL),
        "out_proj_b": w(ks[3], (D_MODEL,), D_MODEL),
        "linear1_w": w(ks[4], (DIM_FF, D_MODEL), D_MODEL),
        "linear1_b": w(ks[5], (DIM_FF,), D_MODEL),
        "linear2_w": w(ks[6], (D_MODEL, DIM_FF), DIM_FF),
        "linear2_b": w(ks[7], (D_MODEL,), DIM_FF),
        "norm1_w": jnp.ones((D_MODEL,), jnp.float32),
        "norm1_b": jnp.zeros((D_MODEL,), jnp.float32),
        "norm2_w": jnp.ones((D_MODEL,), jnp.float32),
        "norm2_b": jnp.zeros((D_MODEL,), jnp.float32),
    }


# --------------------------------- main ---------------------------------------
if __name__ == "__main__":
    key = jax.random.PRNGKey(0)
    k_src, k_pos, k_par = jax.random.split(key, 3)

    src = jax.random.normal(k_src, (SEQ, BATCH, D_MODEL), jnp.float32)
    pos = 0.1 * jax.random.normal(k_pos, (SEQ, BATCH, D_MODEL), jnp.float32)

    params = init_params(k_par)
    prepped = prepare_params(params)          # one-time weight prep (hoisted)
    jax.block_until_ready(jax.tree_util.tree_leaves(prepped))

    fwd = jax.jit(transformer_encoder_layer)
    out = fwd(src, pos, prepped)
    jax.block_until_ready(out)

    assert out.shape == (SEQ, BATCH, D_MODEL)
    assert bool(jnp.all(jnp.isfinite(out)))
    print("KERNEL_OK")
</pallas_src>

<mosaic_0001>
module attributes {stable_mosaic.version = 11 : i64} {
  func.func @_encoder_layer_kernel(%arg0: i32, %arg1: memref<64x128xf32, #tpu.memory_space<vmem>>, %arg2: memref<64x128xf32, #tpu.memory_space<vmem>>, %arg3: memref<128x256xbf16, #tpu.memory_space<vmem>>, %arg4: memref<128x128xbf16, #tpu.memory_space<vmem>>, %arg5: memref<128x128xbf16, #tpu.memory_space<vmem>>, %arg6: memref<128x256xbf16, #tpu.memory_space<vmem>>, %arg7: memref<256x128xbf16, #tpu.memory_space<vmem>>, %arg8: memref<1x1408xf32, #tpu.memory_space<vmem>>, %arg9: memref<64x128xf32, #tpu.memory_space<vmem>>) attributes {dimension_semantics = [#tpu.dimension_semantics<parallel>], iteration_bounds = array<i64: 2>, scalar_prefetch = 0 : i64, scratch_operands = 0 : i64, tpu.core_type = #tpu.core_type<tc>, window_params = [{transform_indices = @transform_0, window_bounds = array<i64: 64, 128>}, {transform_indices = @transform_1, window_bounds = array<i64: 64, 128>}, {pipeline_mode = #tpu.pipeline_mode<synchronous>, transform_indices = @transform_2, window_bounds = array<i64: 128, 256>}, {pipeline_mode = #tpu.pipeline_mode<synchronous>, transform_indices = @transform_3, window_bounds = array<i64: 128, 128>}, {pipeline_mode = #tpu.pipeline_mode<synchronous>, transform_indices = @transform_4, window_bounds = array<i64: 128, 128>}, {pipeline_mode = #tpu.pipeline_mode<synchronous>, transform_indices = @transform_5, window_bounds = array<i64: 128, 256>}, {pipeline_mode = #tpu.pipeline_mode<synchronous>, transform_indices = @transform_6, window_bounds = array<i64: 256, 128>}, {pipeline_mode = #tpu.pipeline_mode<synchronous>, transform_indices = @transform_7, window_bounds = array<i64: 1, 1408>}, {transform_indices = @transform_8, window_bounds = array<i64: 64, 128>}]} {
    %c0 = arith.constant 0 : index
    %c0_0 = arith.constant 0 : index
    %0 = vector.load %arg8[%c0, %c0_0] : memref<1x1408xf32, #tpu.memory_space<vmem>>, vector<1x256xf32>
    %c0_1 = arith.constant 0 : index
    %c256 = arith.constant 256 : index
    %1 = vector.load %arg8[%c0_1, %c256] : memref<1x1408xf32, #tpu.memory_space<vmem>>, vector<1x128xf32>
    %c0_2 = arith.constant 0 : index
    %c384 = arith.constant 384 : index
    %2 = vector.load %arg8[%c0_2, %c384] : memref<1x1408xf32, #tpu.memory_space<vmem>>, vector<1x128xf32>
    %c0_3 = arith.constant 0 : index
    %c512 = arith.constant 512 : index
    %3 = vector.load %arg8[%c0_3, %c512] : memref<1x1408xf32, #tpu.memory_space<vmem>>, vector<1x256xf32>
    %c0_4 = arith.constant 0 : index
    %c768 = arith.constant 768 : index
    %4 = vector.load %arg8[%c0_4, %c768] : memref<1x1408xf32, #tpu.memory_space<vmem>>, vector<1x128xf32>
    %c0_5 = arith.constant 0 : index
    %c896 = arith.constant 896 : index
    %5 = vector.load %arg8[%c0_5, %c896] : memref<1x1408xf32, #tpu.memory_space<vmem>>, vector<1x128xf32>
    %c0_6 = arith.constant 0 : index
    %c1024 = arith.constant 1024 : index
    %6 = vector.load %arg8[%c0_6, %c1024] : memref<1x1408xf32, #tpu.memory_space<vmem>>, vector<1x128xf32>
    %c0_7 = arith.constant 0 : index
    %c1152 = arith.constant 1152 : index
    %7 = vector.load %arg8[%c0_7, %c1152] : memref<1x1408xf32, #tpu.memory_space<vmem>>, vector<1x128xf32>
    %c0_8 = arith.constant 0 : index
    %c1280 = arith.constant 1280 : index
    %8 = vector.load %arg8[%c0_8, %c1280] : memref<1x1408xf32, #tpu.memory_space<vmem>>, vector<1x128xf32>
    %c0_9 = arith.constant 0 : index
    %c0_10 = arith.constant 0 : index
    %9 = vector.load %arg1[%c0_9, %c0_10] : memref<64x128xf32, #tpu.memory_space<vmem>>, vector<64x128xf32>
    %c0_11 = arith.constant 0 : index
    %c0_12 = arith.constant 0 : index
    %10 = vector.load %arg2[%c0_11, %c0_12] : memref<64x128xf32, #tpu.memory_space<vmem>>, vector<64x128xf32>
    %11 = arith.addf %9, %10 : vector<64x128xf32>
    %12 = arith.truncf %11 : vector<64x128xf32> to vector<64x128xbf16>
    %13 = arith.truncf %9 : vector<64x128xf32> to vector<64x128xbf16>
    %c0_13 = arith.constant 0 : index
    %c0_14 = arith.constant 0 : index
    %14 = vector.load %arg3[%c0_13, %c0_14] : memref<128x256xbf16, #tpu.memory_space<vmem>>, vector<128x256xbf16>
    %cst = arith.constant dense<0.000000e+00> : vector<64x256xf32>
    %15 = tpu.matmul %12, %14, %cst {dimension_numbers = #tpu.dot_dimension_numbers<[1], [0], [0], [1], [0, 0, 1, 1], [], []>} : vector<64x128xbf16>, vector<128x256xbf16>, vector<64x256xf32> -> vector<64x256xf32>
    %16 = vector.broadcast %0 : vector<1x256xf32> to vector<64x256xf32>
    %17 = arith.addf %15, %16 : vector<64x256xf32>
    %c0_15 = arith.constant 0 : index
    %c0_16 = arith.constant 0 : index
    %18 = vector.load %arg4[%c0_15, %c0_16] : memref<128x128xbf16, #tpu.memory_space<vmem>>, vector<128x128xbf16>
    %cst_17 = arith.constant dense<0.000000e+00> : vector<64x128xf32>
    %19 = tpu.matmul %13, %18, %cst_17 {dimension_numbers = #tpu.dot_dimension_numbers<[1], [0], [0], [1], [0, 0, 1, 1], [], []>} : vector<64x128xbf16>, vector<128x128xbf16>, vector<64x128xf32> -> vector<64x128xf32>
    %20 = vector.broadcast %1 : vector<1x128xf32> to vector<64x128xf32>
    %21 = arith.addf %19, %20 : vector<64x128xf32>
    %22 = vector.broadcast %2 : vector<1x128xf32> to vector<64x128xf32>
    %23 = arith.addf %9, %22 : vector<64x128xf32>
    %24 = vector.extract_strided_slice %17 {offsets = [0, 0], sizes = [64, 32], strides = [1, 1]} : vector<64x256xf32> to vector<64x32xf32>
    %25 = arith.truncf %24 : vector<64x32xf32> to vector<64x32xbf16>
    %26 = vector.extract_strided_slice %17 {offsets = [0, 128], sizes = [64, 32], strides = [1, 1]} : vector<64x256xf32> to vector<64x32xf32>
    %27 = arith.truncf %26 : vector<64x32xf32> to vector<64x32xbf16>
    %28 = vector.extract_strided_slice %21 {offsets = [0, 0], sizes = [64, 32], strides = [1, 1]} : vector<64x128xf32> to vector<64x32xf32>
    %29 = arith.truncf %28 : vector<64x32xf32> to vector<64x32xbf16>
    %cst_18 = arith.constant dense<0.000000e+00> : vector<64x64xf32>
    %30 = tpu.matmul %25, %27, %cst_18 {dimension_numbers = #tpu.dot_dimension_numbers<[1], [1], [0], [0], [0, 0, 1, 0], [], []>} : vector<64x32xbf16>, vector<64x32xbf16>, vector<64x64xf32> -> vector<64x64xf32>
    %cst_19 = arith.constant dense<0xFF800000> : vector<64xf32>
    %31 = vector.multi_reduction <maximumf>, %30, %cst_19 [1] : vector<64x64xf32> to vector<64xf32>
    %32 = vector.shape_cast %31 : vector<64xf32> to vector<64x1xf32>
    %33 = vector.broadcast %32 : vector<64x1xf32> to vector<64x64xf32>
    %34 = arith.subf %30, %33 : vector<64x64xf32>
    %35 = math.exp %34 : vector<64x64xf32>
    %cst_20 = arith.constant dense<0.000000e+00> : vector<64xf32>
    %36 = vector.multi_reduction <add>, %35, %cst_20 [1] : vector<64x64xf32> to vector<64xf32>
    %37 = vector.shape_cast %36 : vector<64xf32> to vector<64x1xf32>
    %38 = tpu.reciprocal %37 {approx = true} : vector<64x1xf32> -> vector<64x1xf32>
    %39 = vector.broadcast %38 : vector<64x1xf32> to vector<64x64xf32>
    %40 = arith.mulf %35, %39 : vector<64x64xf32>
    %41 = arith.truncf %40 : vector<64x64xf32> to vector<64x64xbf16>
    %cst_21 = arith.constant dense<0.000000e+00> : vector<64x32xf32>
    %42 = tpu.matmul %41, %29, %cst_21 {dimension_numbers = #tpu.dot_dimension_numbers<[1], [0], [0], [1], [0, 0, 1, 1], [], []>} : vector<64x64xbf16>, vector<64x32xbf16>, vector<64x32xf32> -> vector<64x32xf32>
    %43 = arith.truncf %42 : vector<64x32xf32> to vector<64x32xbf16>
    %c0_22 = arith.constant 0 : index
    %c0_23 = arith.constant 0 : index
    %44 = vector.load %arg5[%c0_22, %c0_23] : memref<128x128xbf16, #tpu.memory_space<vmem>>, vector<32x128xbf16>
    %cst_24 = arith.constant dense<0.000000e+00> : vector<64x128xf32>
    %45 = tpu.matmul %43, %44, %cst_24 {dimension_numbers = #tpu.dot_dimension_numbers<[1], [0], [0], [1], [0, 0, 1, 1], [], []>} : vector<64x32xbf16>, vector<32x128xbf16>, vector<64x128xf32> -> vector<64x128xf32>
    %46 = arith.addf %23, %45 : vector<64x128xf32>
    %47 = vector.extract_strided_slice %17 {offsets = [0, 32], sizes = [64, 32], strides = [1, 1]} : vector<64x256xf32> to vector<64x32xf32>
    %48 = arith.truncf %47 : vector<64x32xf32> to vector<64x32xbf16>
    %49 = vector.extract_strided_slice %17 {offsets = [0, 160], sizes = [64, 32], strides = [1, 1]} : vector<64x256xf32> to vector<64x32xf32>
    %50 = arith.truncf %49 : vector<64x32xf32> to vector<64x32xbf16>
    %51 = vector.extract_strided_slice %21 {offsets = [0, 32], sizes = [64, 32], strides = [1, 1]} : vector<64x128xf32> to vector<64x32xf32>
    %52 = arith.truncf %51 : vector<64x32xf32> to vector<64x32xbf16>
    %cst_25 = arith.constant dense<0.000000e+00> : vector<64x64xf32>
    %53 = tpu.matmul %48, %50, %cst_25 {dimension_numbers = #tpu.dot_dimension_numbers<[1], [1], [0], [0], [0, 0, 1, 0], [], []>} : vector<64x32xbf16>, vector<64x32xbf16>, vector<64x64xf32> -> vector<64x64xf32>
    %cst_26 = arith.constant dense<0xFF800000> : vector<64xf32>
    %54 = vector.multi_reduction <maximumf>, %53, %cst_26 [1] : vector<64x64xf32> to vector<64xf32>
    %55 = vector.shape_cast %54 : vector<64xf32> to vector<64x1xf32>
    %56 = vector.broadcast %55 : vector<64x1xf32> to vector<64x64xf32>
    %57 = arith.subf %53, %56 : vector<64x64xf32>
    %58 = math.exp %57 : vector<64x64xf32>
    %cst_27 = arith.constant dense<0.000000e+00> : vector<64xf32>
    %59 = vector.multi_reduction <add>, %58, %cst_27 [1] : vector<64x64xf32> to vector<64xf32>
    %60 = vector.shape_cast %59 : vector<64xf32> to vector<64x1xf32>
    %61 = tpu.reciprocal %60 {approx = true} : vector<64x1xf32> -> vector<64x1xf32>
    %62 = vector.broadcast %61 : vector<64x1xf32> to vector<64x64xf32>
    %63 = arith.mulf %58, %62 : vector<64x64xf32>
    %64 = arith.truncf %63 : vector<64x64xf32> to vector<64x64xbf16>
    %cst_28 = arith.constant dense<0.000000e+00> : vector<64x32xf32>
    %65 = tpu.matmul %64, %52, %cst_28 {dimension_numbers = #tpu.dot_dimension_numbers<[1], [0], [0], [1], [0, 0, 1, 1], [], []>} : vector<64x64xbf16>, vector<64x32xbf16>, vector<64x32xf32> -> vector<64x32xf32>
    %66 = arith.truncf %65 : vector<64x32xf32> to vector<64x32xbf16>
    %c32 = arith.constant 32 : index
    %c0_29 = arith.constant 0 : index
    %67 = vector.load %arg5[%c32, %c0_29] : memref<128x128xbf16, #tpu.memory_space<vmem>>, vector<32x128xbf16>
    %cst_30 = arith.constant dense<0.000000e+00> : vector<64x128xf32>
    %68 = tpu.matmul %66, %67, %cst_30 {dimension_numbers = #tpu.dot_dimension_numbers<[1], [0], [0], [1], [0, 0, 1, 1], [], []>} : vector<64x32xbf16>, vector<32x128xbf16>, vector<64x128xf32> -> vector<64x128xf32>
    %69 = arith.addf %46, %68 : vector<64x128xf32>
    %70 = vector.extract_strided_slice %17 {offsets = [0, 64], sizes = [64, 32], strides = [1, 1]} : vector<64x256xf32> to vector<64x32xf32>
    %71 = arith.truncf %70 : vector<64x32xf32> to vector<64x32xbf16>
    %72 = vector.extract_strided_slice %17 {offsets = [0, 192], sizes = [64, 32], strides = [1, 1]} : vector<64x256xf32> to vector<64x32xf32>
    %73 = arith.truncf %72 : vector<64x32xf32> to vector<64x32xbf16>
    %74 = vector.extract_strided_slice %21 {offsets = [0, 64], sizes = [64, 32], strides = [1, 1]} : vector<64x128xf32> to vector<64x32xf32>
    %75 = arith.truncf %74 : vector<64x32xf32> to vector<64x32xbf16>
    %cst_31 = arith.constant dense<0.000000e+00> : vector<64x64xf32>
    %76 = tpu.matmul %71, %73, %cst_31 {dimension_numbers = #tpu.dot_dimension_numbers<[1], [1], [0], [0], [0, 0, 1, 0], [], []>} : vector<64x32xbf16>, vector<64x32xbf16>, vector<64x64xf32> -> vector<64x64xf32>
    %cst_32 = arith.constant dense<0xFF800000> : vector<64xf32>
    %77 = vector.multi_reduction <maximumf>, %76, %cst_32 [1] : vector<64x64xf32> to vector<64xf32>
    %78 = vector.shape_cast %77 : vector<64xf32> to vector<64x1xf32>
    %79 = vector.broadcast %78 : vector<64x1xf32> to vector<64x64xf32>
    %80 = arith.subf %76, %79 : vector<64x64xf32>
    %81 = math.exp %80 : vector<64x64xf32>
    %cst_33 = arith.constant dense<0.000000e+00> : vector<64xf32>
    %82 = vector.multi_reduction <add>, %81, %cst_33 [1] : vector<64x64xf32> to vector<64xf32>
    %83 = vector.shape_cast %82 : vector<64xf32> to vector<64x1xf32>
    %84 = tpu.reciprocal %83 {approx = true} : vector<64x1xf32> -> vector<64x1xf32>
    %85 = vector.broadcast %84 : vector<64x1xf32> to vector<64x64xf32>
    %86 = arith.mulf %81, %85 : vector<64x64xf32>
    %87 = arith.truncf %86 : vector<64x64xf32> to vector<64x64xbf16>
    %cst_34 = arith.constant dense<0.000000e+00> : vector<64x32xf32>
    %88 = tpu.matmul %87, %75, %cst_34 {dimension_numbers = #tpu.dot_dimension_numbers<[1], [0], [0], [1], [0, 0, 1, 1], [], []>} : vector<64x64xbf16>, vector<64x32xbf16>, vector<64x32xf32> -> vector<64x32xf32>
    %89 = arith.truncf %88 : vector<64x32xf32> to vector<64x32xbf16>
    %c64 = arith.constant 64 : index
    %c0_35 = arith.constant 0 : index
    %90 = vector.load %arg5[%c64, %c0_35] : memref<128x128xbf16, #tpu.memory_space<vmem>>, vector<32x128xbf16>
    %cst_36 = arith.constant dense<0.000000e+00> : vector<64x128xf32>
    %91 = tpu.matmul %89, %90, %cst_36 {dimension_numbers = #tpu.dot_dimension_numbers<[1], [0], [0], [1], [0, 0, 1, 1], [], []>} : vector<64x32xbf16>, vector<32x128xbf16>, vector<64x128xf32> -> vector<64x128xf32>
    %92 = arith.addf %69, %91 : vector<64x128xf32>
    %93 = vector.extract_strided_slice %17 {offsets = [0, 96], sizes = [64, 32], strides = [1, 1]} : vector<64x256xf32> to vector<64x32xf32>
    %94 = arith.truncf %93 : vector<64x32xf32> to vector<64x32xbf16>
    %95 = vector.extract_strided_slice %17 {offsets = [0, 224], sizes = [64, 32], strides = [1, 1]} : vector<64x256xf32> to vector<64x32xf32>
    %96 = arith.truncf %95 : vector<64x32xf32> to vector<64x32xbf16>
    %97 = vector.extract_strided_slice %21 {offsets = [0, 96], sizes = [64, 32], strides = [1, 1]} : vector<64x128xf32> to vector<64x32xf32>
    %98 = arith.truncf %97 : vector<64x32xf32> to vector<64x32xbf16>
    %cst_37 = arith.constant dense<0.000000e+00> : vector<64x64xf32>
    %99 = tpu.matmul %94, %96, %cst_37 {dimension_numbers = #tpu.dot_dimension_numbers<[1], [1], [0], [0], [0, 0, 1, 0], [], []>} : vector<64x32xbf16>, vector<64x32xbf16>, vector<64x64xf32> -> vector<64x64xf32>
    %cst_38 = arith.constant dense<0xFF800000> : vector<64xf32>
    %100 = vector.multi_reduction <maximumf>, %99, %cst_38 [1] : vector<64x64xf32> to vector<64xf32>
    %101 = vector.shape_cast %100 : vector<64xf32> to vector<64x1xf32>
    %102 = vector.broadcast %101 : vector<64x1xf32> to vector<64x64xf32>
    %103 = arith.subf %99, %102 : vector<64x64xf32>
    %104 = math.exp %103 : vector<64x64xf32>
    %cst_39 = arith.constant dense<0.000000e+00> : vector<64xf32>
    %105 = vector.multi_reduction <add>, %104, %cst_39 [1] : vector<64x64xf32> to vector<64xf32>
    %106 = vector.shape_cast %105 : vector<64xf32> to vector<64x1xf32>
    %107 = tpu.reciprocal %106 {approx = true} : vector<64x1xf32> -> vector<64x1xf32>
    %108 = vector.broadcast %107 : vector<64x1xf32> to vector<64x64xf32>
    %109 = arith.mulf %104, %108 : vector<64x64xf32>
    %110 = arith.truncf %109 : vector<64x64xf32> to vector<64x64xbf16>
    %cst_40 = arith.constant dense<0.000000e+00> : vector<64x32xf32>
    %111 = tpu.matmul %110, %98, %cst_40 {dimension_numbers = #tpu.dot_dimension_numbers<[1], [0], [0], [1], [0, 0, 1, 1], [], []>} : vector<64x64xbf16>, vector<64x32xbf16>, vector<64x32xf32> -> vector<64x32xf32>
    %112 = arith.truncf %111 : vector<64x32xf32> to vector<64x32xbf16>
    %c96 = arith.constant 96 : index
    %c0_41 = arith.constant 0 : index
    %113 = vector.load %arg5[%c96, %c0_41] : memref<128x128xbf16, #tpu.memory_space<vmem>>, vector<32x128xbf16>
    %cst_42 = arith.constant dense<0.000000e+00> : vector<64x128xf32>
    %114 = tpu.matmul %112, %113, %cst_42 {dimension_numbers = #tpu.dot_dimension_numbers<[1], [0], [0], [1], [0, 0, 1, 1], [], []>} : vector<64x32xbf16>, vector<32x128xbf16>, vector<64x128xf32> -> vector<64x128xf32>
    %115 = arith.addf %92, %114 : vector<64x128xf32>
    %cst_43 = arith.constant dense<0.000000e+00> : vector<64xf32>
    %116 = vector.multi_reduction <add>, %115, %cst_43 [1] : vector<64x128xf32> to vector<64xf32>
    %117 = vector.shape_cast %116 : vector<64xf32> to vector<64x1xf32>
    %cst_44 = arith.constant 1.280000e+02 : f32
    %118 = vector.broadcast %cst_44 : f32 to vector<64x1xf32>
    %119 = arith.divf %117, %118 : vector<64x1xf32>
    %120 = vector.broadcast %119 : vector<64x1xf32> to vector<64x128xf32>
    %121 = arith.subf %115, %120 : vector<64x128xf32>
    %122 = arith.mulf %121, %121 : vector<64x128xf32>
    %cst_45 = arith.constant dense<0.000000e+00> : vector<64xf32>
    %123 = vector.multi_reduction <add>, %122, %cst_45 [1] : vector<64x128xf32> to vector<64xf32>
    %124 = vector.shape_cast %123 : vector<64xf32> to vector<64x1xf32>
    %cst_46 = arith.constant 1.280000e+02 : f32
    %125 = vector.broadcast %cst_46 : f32 to vector<64x1xf32>
    %126 = arith.divf %124, %125 : vector<64x1xf32>
    %cst_47 = arith.constant 9.99999974E-6 : f32
    %127 = vector.broadcast %cst_47 : f32 to vector<64x1xf32>
    %128 = arith.addf %126, %127 : vector<64x1xf32>
    %129 = math.rsqrt %128 : vector<64x1xf32>
    %130 = vector.broadcast %129 : vector<64x1xf32> to vector<64x128xf32>
    %131 = arith.mulf %121, %130 : vector<64x128xf32>
    %132 = vector.broadcast %5 : vector<1x128xf32> to vector<64x128xf32>
    %133 = arith.mulf %131, %132 : vector<64x128xf32>
    %134 = vector.broadcast %6 : vector<1x128xf32> to vector<64x128xf32>
    %135 = arith.addf %133, %134 : vector<64x128xf32>
    %136 = arith.truncf %135 : vector<64x128xf32> to vector<64x128xbf16>
    %c0_48 = arith.constant 0 : index
    %c0_49 = arith.constant 0 : index
    %137 = vector.load %arg6[%c0_48, %c0_49] : memref<128x256xbf16, #tpu.memory_space<vmem>>, vector<128x256xbf16>
    %cst_50 = arith.constant dense<0.000000e+00> : vector<64x256xf32>
    %138 = tpu.matmul %136, %137, %cst_50 {dimension_numbers = #tpu.dot_dimension_numbers<[1], [0], [0], [1], [0, 0, 1, 1], [], []>} : vector<64x128xbf16>, vector<128x256xbf16>, vector<64x256xf32> -> vector<64x256xf32>
    %139 = vector.broadcast %3 : vector<1x256xf32> to vector<64x256xf32>
    %140 = arith.addf %138, %139 : vector<64x256xf32>
    %cst_51 = arith.constant 5.000000e-01 : f32
    %141 = vector.broadcast %cst_51 : f32 to vector<64x256xf32>
    %142 = arith.mulf %141, %140 : vector<64x256xf32>
    %cst_52 = arith.constant 4.471500e-02 : f32
    %143 = vector.broadcast %cst_52 : f32 to vector<64x256xf32>
    %144 = arith.mulf %143, %140 : vector<64x256xf32>
    %145 = arith.mulf %144, %140 : vector<64x256xf32>
    %146 = arith.mulf %145, %140 : vector<64x256xf32>
    %147 = arith.addf %140, %146 : vector<64x256xf32>
    %cst_53 = arith.constant 0.797884583 : f32
    %148 = vector.broadcast %cst_53 : f32 to vector<64x256xf32>
    %149 = arith.mulf %148, %147 : vector<64x256xf32>
    %150 = math.tanh %149 : vector<64x256xf32>
    %cst_54 = arith.constant 1.000000e+00 : f32
    %151 = vector.broadcast %cst_54 : f32 to vector<64x256xf32>
    %152 = arith.addf %151, %150 : vector<64x256xf32>
    %153 = arith.mulf %142, %152 : vector<64x256xf32>
    %154 = arith.truncf %153 : vector<64x256xf32> to vector<64x256xbf16>
    %c0_55 = arith.constant 0 : index
    %c0_56 = arith.constant 0 : index
    %155 = vector.load %arg7[%c0_55, %c0_56] : memref<256x128xbf16, #tpu.memory_space<vmem>>, vector<256x128xbf16>
    %cst_57 = arith.constant dense<0.000000e+00> : vector<64x128xf32>
    %156 = tpu.matmul %154, %155, %cst_57 {dimension_numbers = #tpu.dot_dimension_numbers<[1], [0], [0], [1], [0, 0, 1, 1], [], []>} : vector<64x256xbf16>, vector<256x128xbf16>, vector<64x128xf32> -> vector<64x128xf32>
    %157 = vector.broadcast %4 : vector<1x128xf32> to vector<64x128xf32>
    %158 = arith.addf %156, %157 : vector<64x128xf32>
    %159 = arith.addf %135, %158 : vector<64x128xf32>
    %cst_58 = arith.constant dense<0.000000e+00> : vector<64xf32>
    %160 = vector.multi_reduction <add>, %159, %cst_58 [1] : vector<64x128xf32> to vector<64xf32>
    %161 = vector.shape_cast %160 : vector<64xf32> to vector<64x1xf32>
    %cst_59 = arith.constant 1.280000e+02 : f32
    %162 = vector.broadcast %cst_59 : f32 to vector<64x1xf32>
    %163 = arith.divf %161, %162 : vector<64x1xf32>
    %164 = vector.broadcast %163 : vector<64x1xf32> to vector<64x128xf32>
    %165 = arith.subf %159, %164 : vector<64x128xf32>
    %166 = arith.mulf %165, %165 : vector<64x128xf32>
    %cst_60 = arith.constant dense<0.000000e+00> : vector<64xf32>
    %167 = vector.multi_reduction <add>, %166, %cst_60 [1] : vector<64x128xf32> to vector<64xf32>
    %168 = vector.shape_cast %167 : vector<64xf32> to vector<64x1xf32>
    %cst_61 = arith.constant 1.280000e+02 : f32
    %169 = vector.broadcast %cst_61 : f32 to vector<64x1xf32>
    %170 = arith.divf %168, %169 : vector<64x1xf32>
    %cst_62 = arith.constant 9.99999974E-6 : f32
    %171 = vector.broadcast %cst_62 : f32 to vector<64x1xf32>
    %172 = arith.addf %170, %171 : vector<64x1xf32>
    %173 = math.rsqrt %172 : vector<64x1xf32>
    %174 = vector.broadcast %173 : vector<64x1xf32> to vector<64x128xf32>
    %175 = arith.mulf %165, %174 : vector<64x128xf32>
    %176 = vector.broadcast %7 : vector<1x128xf32> to vector<64x128xf32>
    %177 = arith.mulf %175, %176 : vector<64x128xf32>
    %178 = vector.broadcast %8 : vector<1x128xf32> to vector<64x128xf32>
    %179 = arith.addf %177, %178 : vector<64x128xf32>
    %c0_63 = arith.constant 0 : index
    %c0_64 = arith.constant 0 : index
    %180 = vector.load %arg9[%c0_63, %c0_64] : memref<64x128xf32, #tpu.memory_space<vmem>>, vector<64x128xf32>
    tpu.vector_store %arg9[%c0_63, %c0_64], %179 {strides = array<i32>} : memref<64x128xf32, #tpu.memory_space<vmem>>, vector<64x128xf32>,
    return
  }
  func.func @transform_0(%arg0: i32) -> (i32, i32) {
    %c0_i32 = arith.constant 0 : i32
    %c0_i32_0 = arith.constant 0 : i32
    return %c0_i32, %arg0 : i32, i32
  }
  func.func @transform_1(%arg0: i32) -> (i32, i32) {
    %c0_i32 = arith.constant 0 : i32
    %c0_i32_0 = arith.constant 0 : i32
    return %c0_i32, %arg0 : i32, i32
  }
  func.func @transform_2(%arg0: i32) -> (i32, i32) {
    %c0_i32 = arith.constant 0 : i32
    %c0_i32_0 = arith.constant 0 : i32
    %c0_i32_1 = arith.constant 0 : i32
    return %c0_i32, %c0_i32_0 : i32, i32
  }
  func.func @transform_3(%arg0: i32) -> (i32, i32) {
    %c0_i32 = arith.constant 0 : i32
    %c0_i32_0 = arith.constant 0 : i32
    %c0_i32_1 = arith.constant 0 : i32
    return %c0_i32, %c0_i32_0 : i32, i32
  }
  func.func @transform_4(%arg0: i32) -> (i32, i32) {
    %c0_i32 = arith.constant 0 : i32
    %c0_i32_0 = arith.constant 0 : i32
    %c0_i32_1 = arith.constant 0 : i32
    return %c0_i32, %c0_i32_0 : i32, i32
  }
  func.func @transform_5(%arg0: i32) -> (i32, i32) {
    %c0_i32 = arith.constant 0 : i32
    %c0_i32_0 = arith.constant 0 : i32
    %c0_i32_1 = arith.constant 0 : i32
    return %c0_i32, %c0_i32_0 : i32, i32
  }
  func.func @transform_6(%arg0: i32) -> (i32, i32) {
    %c0_i32 = arith.constant 0 : i32
    %c0_i32_0 = arith.constant 0 : i32
    %c0_i32_1 = arith.constant 0 : i32
    return %c0_i32, %c0_i32_0 : i32, i32
  }
  func.func @transform_7(%arg0: i32) -> (i32, i32) {
    %c0_i32 = arith.constant 0 : i32
    %c0_i32_0 = arith.constant 0 : i32
    %c0_i32_1 = arith.constant 0 : i32
    return %c0_i32, %c0_i32_0 : i32, i32
  }
  func.func @transform_8(%arg0: i32) -> (i32, i32) {
    %c0_i32 = arith.constant 0 : i32
    %c0_i32_0 = arith.constant 0 : i32
    return %c0_i32, %arg0 : i32, i32
  }
}

</mosaic_0001>

<bundles_post_ra>
// kernel: transformer_encoder_layer.1
= control target key start
LH: loop header
LB: loop body
LE: loop exit
PB: predicated region body
PF: predicated region fallthrough
CT: control target
= control target key end

     0   :  { %s4208_s27 = smov 0   ;;  %s4210_s28 = smov 0   ;;  %s5291_s0 = inlined_call_operand.vmem [shape: f32[64,256], index: 0, kind: input, shape index: {}]   ;;  %s5292_s1 = inlined_call_operand.vmem [shape: f32[64,256], index: 1, kind: input, shape index: {}]   ;;  %s5293_s2 = inlined_call_operand.vmem [shape: bf16[128,256], index: 2, kind: input, shape index: {}]   ;;  %s5294_s3 = inlined_call_operand.vmem [shape: bf16[128,128], index: 3, kind: input, shape index: {}]   ;;  %s5295_s4 = inlined_call_operand.vmem [shape: bf16[128,128], index: 4, kind: input, shape index: {}]   ;;  %s5296_s5 = inlined_call_operand.vmem [shape: bf16[128,256], index: 5, kind: input, shape index: {}]   ;;  %s5297_s6 = inlined_call_operand.vmem [shape: bf16[256,128], index: 6, kind: input, shape index: {}]   ;;  %s5298_s7 = inlined_call_operand.vmem [shape: f32[1,1408], index: 7, kind: input, shape index: {}]   ;;  %s5299_s8 = inlined_call_operand.vmem [shape: f32[64,256], index: 8, kind: output, shape index: {}]  }
   0x1   :  { %s4212_s29 = smov 0  }
   0x2 LB: > { %s3304_s30 = sadd.s32 4294967295, %s4157_s29   ;;  %s4225_s9 = sadd.s32 1, %s4157_s29   ;;  %s4157_s29 = sphi %s4212_s29, %s5304_s29   ;;  %s4153_s28 = sphi %s4210_s28, %s5303_s28   ;;  %s4149_s27 = sphi %s4208_s27, %s5302_s27  }
   0x3   : > { %s22_s10 = ssub.s32 %s4157_s29, %s4225_s9  ;;  %s25_s11 = sadd.s32 1, %s4153_s28 }
   0x4   : > { %p23_p0 = scmp.eq.s32.totalorder %s22_s10, 0  ;;  %p32_p1 = scmp.ne.s32.totalorder %s4153_s28, %s4149_s27 }
   0x5   : > { %p33_p2 = scmp.eq.s32.totalorder %s4157_s29, 0  ;;  %p214_p3 = scmp.eq.s32.totalorder %s3304_s30, 1 }
   0x6   : > { %s4236_s12 = scalar_select %p23_p0, %s4153_s28, %s25_s11  }
   0x7   : > { %p4238_p4 = por %p33_p2, %p32_p1  ;;  %p4242_p5 = por %p214_p3, %p32_p1 }
   0x8   : > { %p3307_p6 = scmp.ge.s32.totalorder %s4157_s29, 2 }
   0xa   : > { %254 = sbr.rel (%p3307_p6) target bundleno = 33 (0x21), region = 40 }
  0x11   : > { %257 = sbr.rel (!%p4238_p4) target bundleno = 25 (0x19), region = 44  ;;  %s259_s15 = sand.u32 (%p4238_p4), 1, %s4153_s28  }
  0x12   : > { %s3309_s16 = sshll.u32 (%p4238_p4), %s4157_s29, 3  ;;  %s3308_s17 = sshll.u32 (%p4238_p4), %s259_s15, 6 }
  0x13   : > { %s263_s20 = scalar_lea.vmem (%p4238_p4), %s5291_s0, %s3309_s16  ;;  %s261_s21 = scalar_lea.vmem (%p4238_p4), [#allocation2], %s3308_s17 }
  0x14   : > { %v305_v0 = vld [vmem:[%s263_s20] sm:$0xff] (%p4238_p4)  ;;  %v307_v1 = vld [vmem:[%s263_s20 + $0x10] sm:$0xff] (%p4238_p4) }
  0x15   : > { %v309_v2 = vld [vmem:[%s263_s20 + $0x20] sm:$0xff] (%p4238_p4)  ;;  %306 = vst [vmem:[%s261_s21] sm:$0xff] (%p4238_p4), %v305_v0  ;;  %308 = vst [vmem:[%s261_s21 + $0x8] sm:$0xff] (%p4238_p4), %v307_v1  ;;  %v311_v3 = vld [vmem:[%s263_s20 + $0x30] sm:$0xff] (%p4238_p4) }
  0x16   : > { %310 = vst [vmem:[%s261_s21 + $0x10] sm:$0xff] (%p4238_p4), %v309_v2  ;;  %v313_v4 = vld [vmem:[%s263_s20 + $0x40] sm:$0xff] (%p4238_p4)  ;;  %v315_v5 = vld [vmem:[%s263_s20 + $0x50] sm:$0xff] (%p4238_p4)  ;;  %312 = vst [vmem:[%s261_s21 + $0x18] sm:$0xff] (%p4238_p4), %v311_v3 }
  0x17   : > { %314 = vst [vmem:[%s261_s21 + $0x20] sm:$0xff] (%p4238_p4), %v313_v4  ;;  %316 = vst [vmem:[%s261_s21 + $0x28] sm:$0xff] (%p4238_p4), %v315_v5  ;;  %v317_v6 = vld [vmem:[%s263_s20 + $0x60] sm:$0xff] (%p4238_p4)  ;;  %v319_v7 = vld [vmem:[%s263_s20 + $0x70] sm:$0xff] (%p4238_p4) }
  0x18   : > { %318 = vst [vmem:[%s261_s21 + $0x30] sm:$0xff] %v317_v6  ;;  %320 = vst [vmem:[%s261_s21 + $0x38] sm:$0xff] %v319_v7 }
  0x19 PF: > { %326 = sbr.rel (!%p4238_p4) target bundleno = 33 (0x21), region = 82  ;;  %s328_s22 = sand.u32 (%p4238_p4), 1, %s4153_s28  }
  0x1a   : > { %s3311_s23 = sshll.u32 (%p4238_p4), %s4157_s29, 3  ;;  %s3310_s24 = sshll.u32 (%p4238_p4), %s328_s22, 6 }
  0x1b   : > { %s332_s10 = scalar_lea.vmem (%p4238_p4), %s5292_s1, %s3311_s23  ;;  %s330_s11 = scalar_lea.vmem (%p4238_p4), [#allocation3], %s3310_s24 }
  0x1c   : > { %v374_v8 = vld [vmem:[%s332_s10] sm:$0xff] (%p4238_p4)  ;;  %v376_v9 = vld [vmem:[%s332_s10 + $0x10] sm:$0xff] (%p4238_p4) }
  0x1d   : > { %v378_v10 = vld [vmem:[%s332_s10 + $0x20] sm:$0xff] (%p4238_p4)  ;;  %375 = vst [vmem:[%s330_s11] sm:$0xff] (%p4238_p4), %v374_v8  ;;  %377 = vst [vmem:[%s330_s11 + $0x8] sm:$0xff] (%p4238_p4), %v376_v9  ;;  %v380_v11 = vld [vmem:[%s332_s10 + $0x30] sm:$0xff] (%p4238_p4) }
  0x1e   : > { %379 = vst [vmem:[%s330_s11 + $0x10] sm:$0xff] (%p4238_p4), %v378_v10  ;;  %v382_v12 = vld [vmem:[%s332_s10 + $0x40] sm:$0xff] (%p4238_p4)  ;;  %v384_v13 = vld [vmem:[%s332_s10 + $0x50] sm:$0xff] (%p4238_p4)  ;;  %381 = vst [vmem:[%s330_s11 + $0x18] sm:$0xff] (%p4238_p4), %v380_v11 }
  0x1f   : > { %383 = vst [vmem:[%s330_s11 + $0x20] sm:$0xff] (%p4238_p4), %v382_v12  ;;  %385 = vst [vmem:[%s330_s11 + $0x28] sm:$0xff] (%p4238_p4), %v384_v13  ;;  %v386_v14 = vld [vmem:[%s332_s10 + $0x60] sm:$0xff] (%p4238_p4)  ;;  %v388_v15 = vld [vmem:[%s332_s10 + $0x70] sm:$0xff] (%p4238_p4) }
  0x20   : > { %387 = vst [vmem:[%s330_s11 + $0x30] sm:$0xff] %v386_v14  ;;  %389 = vst [vmem:[%s330_s11 + $0x38] sm:$0xff] %v388_v15 }
  0x21 PF: > { %p3312_p7 = scmp.ge.s32.totalorder %s4157_s29, 1  ;;  %p394_p8 = scmp.lt.s32.totalorder %s4157_s29, 3 }
  0x23   : > { %p395_p9 = pnand %p3312_p7, %p394_p8 }
  0x24   : > { %v3855_v16 = vld [vmem:[%s5293_s2 + $0x4] ss:$8 sps:$4 sm:$0xff] (!%p395_p9)   ;;  %v3857_v17 = vld [vmem:[%s5293_s2] ss:$8 sps:$4 sm:$0xff] (!%p395_p9)   ;;  %v4159_v18 = vmov (!%p395_p9), 0   ;;  %s401_s11 = sand.u32 (!%p395_p9), 1, %s4149_s27   ;;  %v503_v61 = vlaneseq (!%p395_p9) }
  0x25   : > { %398 = sbr.rel (%p395_p9) target bundleno = 3248 (0xcb0), region = 120  ;;  %625 = vmatprep.mubr.bf16.mxu0 (!%p395_p9), %v4159_v18  ;;  %593 = vmatprep.subr.bf16.mxu0 (!%p395_p9), %v3855_v16  ;;  %v3858_v19 = vld [vmem:[%s5293_s2 + $0x14] ss:$8 sps:$4 sm:$0xff] (!%p395_p9)   ;;  %v3860_v20 = vld [vmem:[%s5293_s2 + $0x10] ss:$8 sps:$4 sm:$0xff] (!%p395_p9)   ;;  %s4292_s18 = sshll.u32 (!%p395_p9), %s401_s11, 6 }
  0x26   : > { %594 = vmatpush1.bf16.msra.mxu0 (!%p395_p9), %v3857_v17  ;;  %v3861_v21 = vld [vmem:[%s5293_s2 + $0x24] ss:$8 sps:$4 sm:$0xff] (!%p395_p9)   ;;  %v3863_v22 = vld [vmem:[%s5293_s2 + $0x20] ss:$8 sps:$4 sm:$0xff] (!%p395_p9)   ;;  %v3864_v23 = vld [vmem:[%s5293_s2 + $0x34] ss:$8 sps:$4 sm:$0xff] (!%p395_p9)  }
  0x27   : > { %595 = vmatprep.subr.bf16.mxu0 (!%p395_p9), %v3858_v19  ;;  %v3866_v24 = vld [vmem:[%s5293_s2 + $0x30] ss:$8 sps:$4 sm:$0xff] (!%p395_p9)   ;;  %v3867_v25 = vld [vmem:[%s5293_s2 + $0x44] ss:$8 sps:$4 sm:$0xff] (!%p395_p9)   ;;  %v3869_v26 = vld [vmem:[%s5293_s2 + $0x40] ss:$8 sps:$4 sm:$0xff] (!%p395_p9)  }
  0x28   : > { %v3870_v27 = vld [vmem:[%s5293_s2 + $0x54] ss:$8 sps:$4 sm:$0xff] (!%p395_p9)   ;;  %v3872_v28 = vld [vmem:[%s5293_s2 + $0x50] ss:$8 sps:$4 sm:$0xff] (!%p395_p9)   ;;  %v3873_v29 = vld [vmem:[%s5293_s2 + $0x64] ss:$8 sps:$4 sm:$0xff] (!%p395_p9)  }
  0x29   : > { %v3875_v30 = vld [vmem:[%s5293_s2 + $0x60] ss:$8 sps:$4 sm:$0xff] (!%p395_p9)   ;;  %s4310_s11 = scalar_lea.vmem (!%p395_p9), [#allocation2], %s4292_s18  ;;  %s4319_s13 = scalar_lea.vmem (!%p395_p9), [#allocation3], %s4292_s18  ;;  %v3876_v35 = vld [vmem:[%s5293_s2 + $0x74] ss:$8 sps:$4 sm:$0xff] (!%p395_p9)  }
  0x2a   : > { %596 = vmatpush1.bf16.msra.mxu0 (!%p395_p9), %v3860_v20  ;;  %v4313_v31 = vld [vmem:[%s4310_s11] sm:$0xff] (!%p395_p9)  ;;  %v4316_v32 = vld [vmem:[%s4310_s11 + $0x8] sm:$0xff] (!%p395_p9)  ;;  %v3878_v36 = vld [vmem:[%s5293_s2 + $0x70] ss:$8 sps:$4 sm:$0xff] (!%p395_p9)   ;;  %v4364_v62 = vshrl.u32 (!%p395_p9), %v503_v61, 7  ;;  %vm827_vm0 = vcmask (!%p395_p9), 261120  }
  0x2b   : > { %597 = vmatprep.subr.bf16.mxu0 (!%p395_p9), %v3861_v21  ;;  %v462_v33 = vld [vmem:[%s4319_s13] sm:$0xff] (!%p395_p9)  ;;  %v463_v34 = vld [vmem:[%s4319_s13 + $0x8] sm:$0xff] (!%p395_p9)  ;;  %v4332_v39 = vld [vmem:[%s4310_s11 + $0x10] sm:$0xff] (!%p395_p9)  ;;  %s4160_s21 = smov (!%p395_p9), 96   ;;  %vm917_vm1 = vcmask (!%p395_p9), 523264   ;;  %s4161_s10 = smov (!%p395_p9), 64  }
  0x2c   : > { %v470_v37 = vadd.f32 %v462_v33, %v4313_v31  ;;  %v471_v38 = vadd.f32 %v463_v34, %v4316_v32  ;;  %v4335_v40 = vld [vmem:[%s4310_s11 + $0x18] sm:$0xff]  ;;  %v464_v41 = vld [vmem:[%s4319_s13 + $0x10] sm:$0xff]  ;;  %v4343_v46 = vld [vmem:[%s4310_s11 + $0x20] sm:$0xff]  ;;  %v505_v63 = vsub.s32 0, %v4364_v62  ;;  %v509_v1 = vsub.s32 1, %v4364_v62  ;;  %s4162_s19 = smov 32  }
  0x2d   : > { %v465_v42 = vld [vmem:[%s4319_s13 + $0x18] sm:$0xff]  ;;  %v472_v44 = vadd.f32 %v464_v41, %v4332_v39  ;;  %v4346_v47 = vld [vmem:[%s4310_s11 + $0x28] sm:$0xff]  ;;  %v466_v48 = vld [vmem:[%s4319_s13 + $0x20] sm:$0xff]  ;;  %s5251_s20 = scalar_lea.vmem [#allocation4], %s4292_s18  ;;  %s3436_s18 = sshll.u32 (%p4242_p5), %s3304_s30, 3 }
  0x2e   : > { %598 = vmatpush1.bf16.msra.mxu0 %v3863_v22  ;;  %v478_v43 = vpack.c.bf16 %v471_v38, %v470_v37  ;;  %v473_v45 = vadd.f32 %v465_v42, %v4335_v40  ;;  %v467_v49 = vld [vmem:[%s4319_s13 + $0x28] sm:$0xff]  ;;  %v474_v51 = vadd.f32 %v466_v48, %v4343_v46  ;;  %v4354_v54 = vld [vmem:[%s4310_s11 + $0x30] sm:$0xff]  ;;  %v4357_v55 = vld [vmem:[%s4310_s11 + $0x38] sm:$0xff]  ;;  %s3169_s23 = scalar_lea.vmem (%p4242_p5), %s5299_s8, %s3436_s18 }
  0x2f   : > { %599 = vmatprep.subr.bf16.mxu0 %v3864_v23  ;;  %v475_v52 = vadd.f32 %v467_v49, %v4346_v47  ;;  %v468_v56 = vld [vmem:[%s4319_s13 + $0x30] sm:$0xff]  ;;  %v469_v57 = vld [vmem:[%s4319_s13 + $0x38] sm:$0xff]  ;;  %v445_v0 = vld [vmem:[%s5298_s7] sm:$0x3] }
  0x30   : > { %v479_v50 = vpack.c.bf16 %v473_v45, %v472_v44  ;;  %v476_v58 = vadd.f32 %v468_v56, %v4354_v54  ;;  %v477_v59 = vadd.f32 %v469_v57, %v4357_v55  ;;  %v506_v2 = vrot.slane %v445_v0, %v505_v63 }
  0x31   : > { %v480_v53 = vpack.c.bf16 %v475_v52, %v474_v51  ;;  %v510_v4 = vrot.slane %v445_v0, %v509_v1 }
  0x32   : > { %600 = vmatpush1.bf16.msra.mxu0 %v3866_v24  ;;  %v481_v60 = vpack.c.bf16 %v477_v59, %v476_v58 }
  0x33   : > { %601 = vmatprep.subr.bf16.mxu0 %v3867_v25 }
  0x36   : > { %602 = vmatpush1.bf16.msra.mxu0 %v3869_v26 }
  0x37   : > { %603 = vmatprep.subr.bf16.mxu0 %v3870_v27 }
  0x3a   : > { %604 = vmatpush1.bf16.msra.mxu0 %v3872_v28 }
  0x3b   : > { %605 = vmatprep.subr.bf16.mxu0 %v3873_v29 }
  0x3e   : > { %606 = vmatpush1.bf16.msra.mxu0 %v3875_v30 }
  0x3f   : > { %607 = vmatprep.subr.bf16.mxu0 %v3876_v35 }
  0x42   : > { %608 = vmatpush1.bf16.msra.mxu0 %v3878_v36 }
  0x45   : > { %626 = vmatmul.mubr.bf16.vlgmr.msra.gmra.mrb[0].mxu0 %v478_v43 }
  0x46   : > { %635 = vmatprep.mubr.bf16.mxu0 %v4159_v18 }
  0x4d   : > { %636 = vmatmul.mubr.bf16.gmra.mrb[4].mxu0 %v479_v50 }
  0x4e   : > { %645 = vmatprep.mubr.bf16.mxu0 %v4159_v18 }
  0x55   : > { %646 = vmatmul.mubr.bf16.gmra.mrb[8].mxu0 %v480_v53 }
  0x56   : > { %655 = vmatprep.mubr.bf16.mxu0 %v4159_v18 }
  0x5d   : > { %656 = vmatmul.mubr.bf16.gmra.mrb[12].mxu0 %v481_v60 }
 0x118   : > { %v627_v3 = vpop.f32.mrb[0].mxu0 }
 0x119   : > { %v629_v5 = vpop.f32.mrb[1].mxu0  ;;  %v628_v7 = vadd.f32 %v627_v3, %v506_v2  ;;  %v3879_v3 = vld [vmem:[%s5294_s3] sm:$0xff]  }
 0x11a   : > { %v631_v6 = vpop.f32.mrb[2].mxu0  ;;  %v630_v10 = vadd.f32 %v629_v5, %v510_v4  ;;  %v482_v5 = vpack.c.bf16 %v4316_v32, %v4313_v31  ;;  %3579 = vmatprep.subr.bf16.mxu1 %v3879_v3  ;;  %v3882_v31 = vld [vmem:[%s5294_s3 + $0x18] sm:$0xff]  }
 0x11b   : > { %v632_v8 = vadd.f32 %v631_v6, %v506_v2  ;;  %v633_v9 = vpop.f32.mrb[3].mxu0  ;;  %3580 = vmatpush3.bf16.msra.mxu1 %v3879_v3 }
 0x11c   : > { %v634_v11 = vadd.f32 %v633_v9, %v510_v4  ;;  %3595 = vmatprep.mubr.bf16.mxu1 %v482_v5  ;;  %v3883_v9 = vld [vmem:[%s5294_s3 + $0x20] sm:$0xff]  }
 0x11d   : > { %v4375_v12 = vpack.c.bf16 %v632_v8, %v628_v7  ;;  %v3881_v7 = vld [vmem:[%s5294_s3 + $0x10] sm:$0xff]  }
 0x11e   : > { %v4377_v13 = vpack.c.bf16 %v634_v11, %v630_v10  ;;  %v3884_v11 = vld [vmem:[%s5294_s3 + $0x28] sm:$0xff]  }
 0x11f   : > { %3611 = vmatprep.mubr.msk.bf16.mxu0 %vm827_vm0, %v4375_v12 }
 0x120   : > { %v637_v14 = vpop.f32.mrb[4].mxu0  ;;  %1208 = vrot.lane.b32.xlu0 %v4377_v13, %s4160_s21  ;;  %3811 = vmatprep.subr.msk.bf16.mxu0 %vm827_vm0, %v4377_v13  ;;  %v841_v15 = vsel %vm827_vm0, %v4377_v13, 0 }
 0x121   : > { %v639_v16 = vpop.f32.mrb[5].mxu0  ;;  %3604 = vmatpush3.bf16.xpose.msra.mxu0 %v841_v15  ;;  %v638_v19 = vadd.f32 %v637_v14, %v506_v2  ;;  %v3885_v15 = vld [vmem:[%s5294_s3 + $0x30] sm:$0xff]  }
 0x122   : > { %v641_v17 = vpop.f32.mrb[6].mxu0  ;;  %v640_v22 = vadd.f32 %v639_v16, %v510_v4  ;;  %v3886_v16 = vld [vmem:[%s5294_s3 + $0x38] sm:$0xff]  }
 0x123   : > { %v642_v20 = vadd.f32 %v641_v17, %v506_v2  ;;  %v643_v21 = vpop.f32.mrb[7].mxu0  ;;  %v483_v17 = vpack.c.bf16 %v4335_v40, %v4332_v39 }
 0x124   : > { %v644_v23 = vadd.f32 %v643_v21, %v510_v4 }
 0x125   : > { %v4387_v24 = vpack.c.bf16 %v642_v20, %v638_v19  ;;  %v484_v19 = vpack.c.bf16 %v4346_v47, %v4343_v46  ;;  %v485_v20 = vpack.c.bf16 %v4357_v55, %v4354_v54 }
 0x126   : > { %v4389_v25 = vpack.c.bf16 %v644_v23, %v640_v22 }
 0x128   : > { %v647_v26 = vpop.f32.mrb[8].mxu0  ;;  %1210 = vrot.lane.b32.xlu0 %v4389_v25, %s4160_s21  ;;  %3812 = vmatprep.subr.msk.bf16.mxu0 %vm827_vm0, %v4389_v25  ;;  %v844_v27 = vsel %vm827_vm0, %v4389_v25, 0 }
 0x129   : > { %v649_v28 = vpop.f32.mrb[9].mxu0  ;;  %3606 = vmatpush3.bf16.xpose.msra.mxu0 %v844_v27  ;;  %v648_v30 = vadd.f32 %v647_v26, %v506_v2 }
 0x12a   : > { %v651_v29 = vpop.f32.mrb[10].mxu0  ;;  %v650_v35 = vadd.f32 %v649_v28, %v510_v4 }
 0x12b   : > { %v652_v33 = vadd.f32 %v651_v29, %v506_v2  ;;  %v653_v34 = vpop.f32.mrb[11].mxu0 }
 0x12c   : > { %v654_v36 = vadd.f32 %v653_v34, %v510_v4  ;;  %1196 = vrot.lane.b32.xlu0 %v4375_v12, %s4160_s21 }
 0x12d   : > { %v4399_v37 = vpack.c.bf16 %v652_v33, %v648_v30 }
 0x12e   : > { %v4401_v38 = vpack.c.bf16 %v654_v36, %v650_v35 }
 0x130   : > { %v657_v41 = vpop.f32.mrb[12].mxu0  ;;  %1212 = vrot.lane.b32.xlu1 %v4401_v38, %s4160_s21  ;;  %3813 = vmatprep.subr.msk.bf16.mxu0 %vm827_vm0, %v4401_v38  ;;  %v847_v42 = vsel %vm827_vm0, %v4401_v38, 0 }
 0x131   : > { %1200 = vrot.lane.b32.xlu0 %v4399_v37, %s4160_s21  ;;  %v659_v43 = vpop.f32.mrb[13].mxu0  ;;  %3608 = vmatpush3.bf16.xpose.msra.mxu0 %v847_v42  ;;  %v658_v45 = vadd.f32 %v657_v41, %v506_v2 }
 0x132   : > { %v661_v44 = vpop.f32.mrb[14].mxu0  ;;  %v660_v50 = vadd.f32 %v659_v43, %v510_v4 }
 0x133   : > { %v662_v48 = vadd.f32 %v661_v44, %v506_v2  ;;  %v663_v49 = vpop.f32.mrb[15].mxu0 }
 0x134   : > { %v664_v51 = vadd.f32 %v663_v49, %v510_v4  ;;  %v3880_v4 = vld [vmem:[%s5294_s3 + $0x8] sm:$0xff]  }
 0x135   : > { %v4411_v52 = vpack.c.bf16 %v662_v48, %v658_v45  ;;  %3581 = vmatprep.subr.bf16.mxu1 %v3880_v4 }
 0x136   : > { %v4413_v53 = vpack.c.bf16 %v664_v51, %v660_v50  ;;  %3582 = vmatpush3.bf16.msra.mxu1 %v3880_v4 }
 0x137   : > { %3583 = vmatprep.subr.bf16.mxu1 %v3881_v7 }
 0x138   : > { %1214 = vrot.lane.b32.xlu1 %v4413_v53, %s4160_s21  ;;  %3814 = vmatprep.subr.msk.bf16.mxu0 %vm827_vm0, %v4413_v53  ;;  %v850_v56 = vsel %vm827_vm0, %v4413_v53, 0 }
 0x139   : > { %3610 = vmatpush3.bf16.xpose.msra.mxu0 %v850_v56 }
 0x13a   : > { %3584 = vmatpush3.bf16.msra.mxu1 %v3881_v7 }
 0x13b   : > { %3585 = vmatprep.subr.bf16.mxu1 %v3882_v31 }
 0x13c   : > { %1198 = vrot.lane.b32.xlu1 %v4387_v24, %s4160_s21 }
 0x13e   : > { %3586 = vmatpush3.bf16.msra.mxu1 %v3882_v31 }
 0x13f   : > { %3587 = vmatprep.subr.bf16.mxu1 %v3883_v9 }
 0x140   : > { %1202 = vrot.lane.b32.xlu1 %v4411_v52, %s4160_s21  ;;  %3612 = vmatmul.mubr.msk.bf16.vlgmr.msra.gmra.mrb[16].mxu0 %vm827_vm0, %v4387_v24 }
 0x141   : > { %3615 = vmatprep.mubr.msk.bf16.mxu0 %vm827_vm0, %v4399_v37 }
 0x142   : > { %3588 = vmatpush3.bf16.msra.mxu1 %v3883_v9 }
 0x143   : > { %3589 = vmatprep.subr.bf16.mxu1 %v3884_v11 }
 0x146   : > { %3590 = vmatpush3.bf16.msra.mxu1 %v3884_v11 }
 0x147   : > { %3591 = vmatprep.subr.bf16.mxu1 %v3885_v15 }
 0x148   : > { %3616 = vmatmul.mubr.msk.bf16.gmra.mrb[20].mxu0 %vm827_vm0, %v4411_v52 }
 0x14a   : > { %3592 = vmatpush3.bf16.msra.mxu1 %v3885_v15 }
 0x14b   : > { %3593 = vmatprep.subr.bf16.mxu1 %v3886_v16 }
 0x14e   : > { %3594 = vmatpush3.bf16.msra.mxu1 %v3886_v16 }
 0x151   : > { %3596 = vmatmul.mubr.bf16.vlgmr.msra.gmra.mrb[0].mxu1 %v483_v17 }
 0x152   : > { %3599 = vmatprep.mubr.bf16.mxu1 %v484_v19 }
 0x159   : > { %3600 = vmatmul.mubr.bf16.gmra.mrb[4].mxu1 %v485_v20 }
 0x192   : > { %v1209_v57 = vpop.permute.xlu0 %1208 }
 0x193   : > { %3815 = vmatprep.subr.msk.bf16.mxu0 %vm827_vm0, %v1209_v57  ;;  %v1229_v58 = vsel %vm827_vm0, %v1209_v57, 0 }
 0x194   : > { %3648 = vmatpush3.bf16.xpose.msra.mxu0 %v1229_v58 }
 0x19a   : > { %v1211_v59 = vpop.permute.xlu0 %1210 }
 0x19b   : > { %3816 = vmatprep.subr.msk.bf16.mxu0 %vm827_vm0, %v1211_v59  ;;  %v1232_v60 = vsel %vm827_vm0, %v1211_v59, 0 }
 0x19c   : > { %3650 = vmatpush3.bf16.xpose.msra.mxu0 %v1232_v60 }
 0x19e   : > { %v1197_v61 = vpop.permute.xlu0 %1196 }
 0x19f   : > { %3655 = vmatprep.mubr.msk.bf16.mxu0 %vm827_vm0, %v1197_v61 }
 0x1a2   : > { %v1213_v0 = vpop.permute.xlu1 %1212 }
 0x1a3   : > { %3817 = vmatprep.subr.msk.bf16.mxu0 %vm827_vm0, %v1213_v0  ;;  %v1235_v2 = vsel %vm827_vm0, %v1213_v0, 0  ;;  %v1201_v10 = vpop.permute.xlu0 %1200 }
 0x1a4   : > { %3652 = vmatpush3.bf16.xpose.msra.mxu0 %v1235_v2 }
 0x1aa   : > { %v1215_v6 = vpop.permute.xlu1 %1214 }
 0x1ab   : > { %3818 = vmatprep.subr.msk.bf16.mxu0 %vm827_vm0, %v1215_v6  ;;  %v1238_v8 = vsel %vm827_vm0, %v1215_v6, 0 }
 0x1ac   : > { %3654 = vmatpush3.bf16.xpose.msra.mxu0 %v1238_v8 }
 0x1ae   : > { %v1199_v32 = vpop.permute.xlu1 %1198 }
 0x1b2   : > { %v1203_v14 = vpop.permute.xlu1 %1202 }
 0x1b3   : > { %3656 = vmatmul.mubr.msk.bf16.vlgmr.msra.gmra.mrb[24].mxu0 %vm827_vm0, %v1199_v32 }
 0x1b4   : > { %3659 = vmatprep.mubr.msk.bf16.mxu0 %vm827_vm0, %v1201_v10 }
 0x1bb   : > { %3660 = vmatmul.mubr.msk.bf16.gmra.mrb[28].mxu0 %vm827_vm0, %v1203_v14 }
 0x213   : > { %v3613_v21 = vpop.f32.mrb[16].mxu0 }
 0x214   : > { %v886_v22 = vpop.f32.mrb[17].mxu0  ;;  %v924_v40 = vsel %vm917_vm1, %v3613_v21, -inf }
 0x215   : > { %v3614_v23 = vpop.f32.mrb[18].mxu0  ;;  %v918_v26 = vsel %vm917_vm1, %v886_v22, -inf }
 0x216   : > { %919 = vmax.xlane.f32.xlu0 %v918_v26  ;;  %v889_v27 = vpop.f32.mrb[19].mxu0  ;;  %v927_v54 = vsel %vm917_vm1, %v3614_v23, -inf }
 0x217   : > { %v921_v39 = vsel %vm917_vm1, %v889_v27, -inf }
 0x218   : > { %922 = vmax.xlane.f32.xlu1 %v921_v39 }
 0x21a   : > { %925 = vmax.xlane.f32.xlu0 %v924_v40 }
 0x21b   : > { %v3617_v46 = vpop.f32.mrb[20].mxu0 }
 0x21c   : > { %v902_v47 = vpop.f32.mrb[21].mxu0  ;;  %v936_v30 = vsel %vm917_vm1, %v3617_v46, -inf }
 0x21d   : > { %v3618_v28 = vpop.f32.mrb[22].mxu0  ;;  %v930_v55 = vsel %vm917_vm1, %v902_v47, -inf }
 0x21e   : > { %928 = vmax.xlane.f32.xlu0 %v927_v54  ;;  %931 = vmax.xlane.f32.xlu1 %v930_v55  ;;  %v905_v29 = vpop.f32.mrb[23].mxu0  ;;  %v939_v34 = vsel %vm917_vm1, %v3618_v28, -inf  ;;  %v3332_v55 = vld [vmem:[%s5298_s7 + $0x2] ss:$0 sm:$0xff] }
 0x21f   : > { %v933_v33 = vsel %vm917_vm1, %v905_v29, -inf }
 0x222   : > { %937 = vmax.xlane.f32.xlu1 %v936_v30  ;;  %934 = vmax.xlane.f32.xlu0 %v933_v33 }
 0x224   : > { %v3597_v49 = vpop.f32.mrb[0].mxu1 }
 0x225   : > { %v779_v30 = vadd.f32 %v3597_v49, %v3332_v55  ;;  %v770_v33 = vpop.f32.mrb[1].mxu1 }
 0x226   : > { %940 = vmax.xlane.f32.xlu0 %v939_v34 }
 0x286   : > { %v4483_v35 = vpop.f32.mrb[24].mxu0 }
 0x287   : > { %v4485_v36 = vpop.f32.mrb[25].mxu0 }
 0x288   : > { %v4487_v41 = vpop.f32.mrb[26].mxu0 }
 0x289   : > { %v4489_v42 = vpop.f32.mrb[27].mxu0 }
 0x28e   : > { %v4491_v43 = vpop.f32.mrb[28].mxu0 }
 0x28f   : > { %v4493_v44 = vpop.f32.mrb[29].mxu0 }
 0x290   : > { %v4495_v45 = vpop.f32.mrb[30].mxu0 }
 0x291   : > { %v4497_v48 = vpop.f32.mrb[31].mxu0 }
 0x2a3   : > { %v920_v50 = vpop.xlane.xlu0 %919 }
 0x2a4   : > { %v942_v51 = vsub.f32 %v886_v22, %v920_v50  ;;  %v771_v50 = vadd.f32 %v3332_v55, %v770_v33 }
 0x2a5   : > { %v923_v56 = vpop.xlane.xlu1 %922 }
 0x2a6   : > { %v950_v57 = vmul.f32 1.442695, %v942_v51  ;;  %v943_v58 = vsub.f32 %v889_v27, %v923_v56  ;;  %v3598_v51 = vpop.f32.mrb[2].mxu1 }
 0x2a7   : > { %v926_v59 = vpop.xlane.xlu0 %925  ;;  %v782_v56 = vadd.f32 %v3598_v51, %v3332_v55 }
 0x2a8   : > { %3935 = vpow2.f32 %v950_v57  ;;  %v952_v60 = vmul.f32 1.442695, %v943_v58  ;;  %v944_v61 = vsub.f32 %v3613_v21, %v926_v59  ;;  %v773_v57 = vpop.f32.mrb[3].mxu1 }
 0x2a9   : > { %v774_v58 = vadd.f32 %v3332_v55, %v773_v57  ;;  %v4534_v59 = vpack.c.bf16 %v782_v56, %v779_v30 }
 0x2aa   : > { %3937 = vpow2.f32 %v952_v60  ;;  %v954_v0 = vmul.f32 1.442695, %v944_v61  ;;  %v3601_v61 = vpop.f32.mrb[4].mxu1 }
 0x2ab   : > { %v929_v2 = vpop.xlane.xlu0 %928  ;;  %v932_v3 = vpop.xlane.xlu1 %931  ;;  %v4536_v60 = vpack.c.bf16 %v774_v58, %v771_v50 }
 0x2ac   : > { %3939 = vpow2.f32 %v954_v0  ;;  %v945_v4 = vsub.f32 %v3614_v23, %v929_v2  ;;  %v946_v5 = vsub.f32 %v902_v47, %v932_v3  ;;  %v786_v49 = vpop.f32.mrb[5].mxu1 }
 0x2ad   : > { %3619 = vmatprep.subr.bf16.mxu1 %v4536_v60  ;;  %v3602_v0 = vpop.f32.mrb[6].mxu1  ;;  %v787_v3 = vadd.f32 %v3332_v55, %v786_v49 }
 0x2ae   : > { %v956_v6 = vmul.f32 1.442695, %v945_v4  ;;  %v958_v7 = vmul.f32 1.442695, %v946_v5  ;;  %3620 = vmatpush3.bf16.msra.mxu1 %v4536_v60  ;;  %v789_v2 = vpop.f32.mrb[7].mxu1 }
 0x2af   : > { %v938_v8 = vpop.xlane.xlu1 %937  ;;  %v935_v31 = vpop.xlane.xlu0 %934  ;;  %3621 = vmatprep.subr.bf16.mxu1 %v4534_v59  ;;  %v790_v4 = vadd.f32 %v3332_v55, %v789_v2 }
 0x2b0   : > { %3941 = vpow2.f32 %v956_v6  ;;  %v948_v32 = vsub.f32 %v3617_v46, %v938_v8  ;;  %v947_v9 = vsub.f32 %v905_v29, %v935_v31  ;;  %v795_v6 = vadd.f32 %v3601_v61, %v3332_v55 }
 0x2b1   : > { %3943 = vpow2.f32 %v958_v7  ;;  %v4542_v5 = vpack.c.bf16 %v790_v4, %v787_v3  ;;  %v798_v7 = vadd.f32 %v3602_v0, %v3332_v55  ;;  %v1305_v31 = vsel %vm917_vm1, %v4485_v36, -inf }
 0x2b2   : > { %v4499_v10 = vpop.eup %3935  ;;  %v962_v11 = vmul.f32 1.442695, %v948_v32  ;;  %v960_v14 = vmul.f32 1.442695, %v947_v9  ;;  %3622 = vmatpush3.bf16.msra.mxu1 %v4534_v59  ;;  %v1308_v32 = vsel %vm917_vm1, %v4489_v42, -inf  ;;  %v1311_v9 = vsel %vm917_vm1, %v4483_v35, -inf }
 0x2b3   : > { %v941_v15 = vpop.xlane.xlu0 %940  ;;  %v966_v16 = vsel %vm917_vm1, %v4499_v10, 0.0  ;;  %3623 = vmatprep.subr.bf16.mxu1 %v4542_v5  ;;  %v4548_v8 = vpack.c.bf16 %v798_v7, %v795_v6 }
 0x2b4   : > { %v4503_v17 = vpop.eup %3937  ;;  %3945 = vpow2.f32 %v962_v11  ;;  %v949_v19 = vsub.f32 %v3618_v28, %v941_v15  ;;  %967 = vadd.xlane.f32.xlu1 %v966_v16  ;;  %v1317_v11 = vsel %vm917_vm1, %v4493_v44, -inf  ;;  %v1323_v15 = vsel %vm917_vm1, %v4491_v43, -inf }
 0x2b5   : > { %3947 = vpow2.f32 %v960_v14  ;;  %v969_v20 = vsel %vm917_vm1, %v4503_v17, 0.0  ;;  %v1314_v14 = vsel %vm917_vm1, %v4487_v41, -inf  ;;  %v1320_v16 = vsel %vm917_vm1, %v4497_v48, -inf }
 0x2b6   : > { %v4507_v21 = vpop.eup %3939  ;;  %v964_v22 = vmul.f32 1.442695, %v949_v19  ;;  %970 = vadd.xlane.f32.xlu0 %v969_v20  ;;  %3624 = vmatpush3.bf16.msra.mxu1 %v4542_v5  ;;  %v1326_v19 = vsel %vm917_vm1, %v4495_v45, -inf }
 0x2b7   : > { %v972_v23 = vsel %vm917_vm1, %v4507_v21, 0.0  ;;  %3625 = vmatprep.subr.bf16.mxu1 %v4548_v8 }
 0x2b8   : > { %3949 = vpow2.f32 %v964_v22  ;;  %973 = vadd.xlane.f32.xlu1 %v972_v23 }
 0x2ba   : > { %v4511_v26 = vpop.eup %3941  ;;  %3626 = vmatpush3.bf16.msra.mxu1 %v4548_v8 }
 0x2bb   : > { %v4513_v27 = vpop.eup %3943  ;;  %v975_v39 = vsel %vm917_vm1, %v4511_v26, 0.0 }
 0x2bc   : > { %v978_v40 = vsel %vm917_vm1, %v4513_v27, 0.0  ;;  %976 = vadd.xlane.f32.xlu0 %v975_v39 }
 0x2bd   : > { %979 = vadd.xlane.f32.xlu1 %v978_v40 }
 0x2be   : > { %v4519_v46 = vpop.eup %3945 }
 0x2bf   : > { %v4521_v47 = vpop.eup %3947  ;;  %v984_v28 = vsel %vm917_vm1, %v4519_v46, 0.0 }
 0x2c0   : > { %v981_v54 = vsel %vm917_vm1, %v4521_v47, 0.0 }
 0x2c1   : > { %985 = vadd.xlane.f32.xlu1 %v984_v28  ;;  %982 = vadd.xlane.f32.xlu0 %v981_v54 }
 0x2c2   : > { %v4530_v29 = vpop.eup %3949 }
 0x2c3   : > { %v987_v34 = vsel %vm917_vm1, %v4530_v29, 0.0 }
 0x2c5   : > { %988 = vadd.xlane.f32.xlu0 %v987_v34 }
 0x2d2   : > { %1603 = vrot.lane.b32.xlu1 %v4377_v13, %s4161_s10 }
 0x2d6   : > { %1607 = vrot.lane.b32.xlu1 %v4401_v38, %s4161_s10 }
 0x2da   : > { %1609 = vrot.lane.b32.xlu1 %v4413_v53, %s4161_s10 }
 0x2db   : > { %1605 = vrot.lane.b32.xlu0 %v4389_v25, %s4161_s10 }
 0x2de   : > { %1597 = vrot.lane.b32.xlu1 %v4387_v24, %s4161_s10 }
 0x2df   : > { %1595 = vrot.lane.b32.xlu0 %v4375_v12, %s4161_s10 }
 0x2e2   : > { %1601 = vrot.lane.b32.xlu1 %v4411_v52, %s4161_s10 }
 0x2e3   : > { %1599 = vrot.lane.b32.xlu0 %v4399_v37, %s4161_s10 }
 0x302   : > { %1306 = vmax.xlane.f32.xlu0 %v1305_v31 }
 0x306   : > { %1309 = vmax.xlane.f32.xlu1 %v1308_v32  ;;  %1312 = vmax.xlane.f32.xlu0 %v1311_v9  ;;  %v3888_v32 = vld [vmem:[%s5295_s4 + $0x8] sm:$0xff]  }
 0x30a   : > { %1318 = vmax.xlane.f32.xlu1 %v1317_v11  ;;  %1315 = vmax.xlane.f32.xlu0 %v1314_v14 }
 0x30e   : > { %1324 = vmax.xlane.f32.xlu1 %v1323_v15  ;;  %1321 = vmax.xlane.f32.xlu0 %v1320_v16 }
 0x312   : > { %1327 = vmax.xlane.f32.xlu0 %v1326_v19 }
 0x31f   : > { %1401 = vrot.lane.b32.xlu1 %v4536_v60, %s4160_s21 }
 0x341   : > { %v968_v20 = vpop.xlane.xlu1 %967 }
 0x342   : > { %3951 = vrcp.f32 %v968_v20 }
 0x343   : > { %v971_v22 = vpop.xlane.xlu0 %970 }
 0x344   : > { %3953 = vrcp.f32 %v971_v22 }
 0x345   : > { %v974_v23 = vpop.xlane.xlu1 %973 }
 0x346   : > { %3955 = vrcp.f32 %v974_v23 }
 0x349   : > { %v977_v39 = vpop.xlane.xlu0 %976 }
 0x34a   : > { %v980_v40 = vpop.xlane.xlu1 %979  ;;  %3957 = vrcp.f32 %v977_v39 }
 0x34b   : > { %3959 = vrcp.f32 %v980_v40 }
 0x34c   : > { %v3952_v28 = vpop.eup %3951 }
 0x34d   : > { %v998_v33 = vmul.f32 %v3952_v28, %v4499_v10 }
 0x34e   : > { %v3954_v54 = vpop.eup %3953  ;;  %v986_v55 = vpop.xlane.xlu1 %985 }
 0x34f   : > { %v983_v30 = vpop.xlane.xlu0 %982  ;;  %v999_v34 = vmul.f32 %v3954_v54, %v4503_v17 }
 0x350   : > { %3961 = vrcp.f32 %v983_v30  ;;  %v3956_v51 = vpop.eup %3955 }
 0x351   : > { %3963 = vrcp.f32 %v986_v55  ;;  %v1006_v50 = vpack.c.bf16 %v999_v34, %v998_v33  ;;  %v1000_v49 = vmul.f32 %v3956_v51, %v4507_v21 }
 0x352   : > { %v1604_v56 = vpop.permute.xlu1 %1603 }
 0x353   : > { %v989_v57 = vpop.xlane.xlu0 %988  ;;  %3819 = vmatprep.subr.msk.bf16.mxu0 %vm827_vm0, %v1604_v56  ;;  %3627 = vmatprep.mubr.msk.bf16.mxu1 %vm917_vm1, %v1006_v50  ;;  %v1624_v58 = vsel %vm827_vm0, %v1604_v56, 0 }
 0x354   : > { %3965 = vrcp.f32 %v989_v57  ;;  %v3958_v61 = vpop.eup %3957  ;;  %3692 = vmatpush3.bf16.xpose.msra.mxu0 %v1624_v58 }
 0x355   : > { %v1001_v10 = vmul.f32 %v3958_v61, %v4511_v26  ;;  %v3960_v2 = vpop.eup %3959  ;;  %v3887_v26 = vld [vmem:[%s5295_s4] sm:$0xff]  }
 0x356   : > { %v1002_v31 = vmul.f32 %v3960_v2, %v4513_v27  ;;  %v1608_v9 = vpop.permute.xlu1 %1607  ;;  %3635 = vmatprep.subr.bf16.mxu1 %v3887_v26 }
 0x357   : > { %v1606_v17 = vpop.permute.xlu0 %1605  ;;  %v1007_v0 = vpack.c.bf16 %v1001_v10, %v1000_v49  ;;  %v1630_v16 = vsel %vm827_vm0, %v1608_v9, 0 }
 0x358   : > { %3820 = vmatprep.subr.msk.bf16.mxu0 %vm827_vm0, %v1606_v17  ;;  %v1627_v7 = vsel %vm827_vm0, %v1606_v17, 0 }
 0x359   : > { %3628 = vmatmul.mubr.msk.bf16.vlgmr.msra.gmra.mrb[8].mxu1 %vm917_vm1, %v1007_v0 }
 0x35a   : > { %v3962_v3 = vpop.eup %3961  ;;  %3636 = vmatpush3.bf16.msra.mxu1 %v3887_v26  ;;  %v1610_v19 = vpop.permute.xlu1 %1609 }
 0x35b   : > { %v1596_v4 = vpop.permute.xlu0 %1595  ;;  %v3964_v6 = vpop.eup %3963  ;;  %v1003_v21 = vmul.f32 %v3962_v3, %v4521_v47  ;;  %3637 = vmatprep.subr.bf16.mxu1 %v3888_v32  ;;  %v1633_v20 = vsel %vm827_vm0, %v1610_v19, 0 }
 0x35c   : > { %3699 = vmatprep.mubr.msk.bf16.mxu0 %vm827_vm0, %v1596_v4  ;;  %3694 = vmatpush3.bf16.xpose.msra.mxu0 %v1627_v7  ;;  %v1004_v15 = vmul.f32 %v3964_v6, %v4519_v46 }
 0x35d   : > { %3821 = vmatprep.subr.msk.bf16.mxu0 %vm827_vm0, %v1608_v9  ;;  %v1008_v14 = vpack.c.bf16 %v1003_v21, %v1002_v31 }
 0x35e   : > { %v3966_v11 = vpop.eup %3965  ;;  %3638 = vmatpush3.bf16.msra.mxu1 %v3888_v32  ;;  %v1598_v46 = vpop.permute.xlu1 %1597 }
 0x35f   : > { %v1005_v27 = vmul.f32 %v3966_v11, %v4530_v29  ;;  %3631 = vmatprep.mubr.msk.bf16.mxu1 %vm917_vm1, %v1008_v14  ;;  %v1600_v22 = vpop.permute.xlu0 %1599 }
 0x361   : > { %v1009_v47 = vpack.c.bf16 %v1005_v27, %v1004_v15 }
 0x362   : > { %v1602_v29 = vpop.permute.xlu1 %1601 }
 0x363   : > { %3632 = vmatmul.mubr.msk.bf16.gmra.mrb[12].mxu1 %vm917_vm1, %v1009_v47 }
 0x364   : > { %3696 = vmatpush3.bf16.xpose.msra.mxu0 %v1630_v16 }
 0x365   : > { %3822 = vmatprep.subr.msk.bf16.mxu0 %vm827_vm0, %v1610_v19 }
 0x36c   : > { %3698 = vmatpush3.bf16.xpose.msra.mxu0 %v1633_v20 }
 0x373   : > { %3700 = vmatmul.mubr.msk.bf16.vlgmr.msra.gmra.mrb[32].mxu0 %vm827_vm0, %v1598_v46 }
 0x374   : > { %3703 = vmatprep.mubr.msk.bf16.mxu0 %vm827_vm0, %v1600_v22 }
 0x37b   : > { %3704 = vmatmul.mubr.msk.bf16.gmra.mrb[36].mxu0 %vm827_vm0, %v1602_v29 }
 0x38f   : > { %v1307_v23 = vpop.xlane.xlu0 %1306 }
 0x390   : > { %v1329_v39 = vsub.f32 %v4485_v36, %v1307_v23 }
 0x392   : > { %v1337_v30 = vmul.f32 1.442695, %v1329_v39 }
 0x393   : > { %v1310_v40 = vpop.xlane.xlu1 %1309  ;;  %v1313_v28 = vpop.xlane.xlu0 %1312 }
 0x394   : > { %v1331_v54 = vsub.f32 %v4483_v35, %v1313_v28  ;;  %v1330_v33 = vsub.f32 %v4489_v42, %v1310_v40 }
 0x396   : > { %v1341_v55 = vmul.f32 1.442695, %v1331_v54  ;;  %v1339_v57 = vmul.f32 1.442695, %v1330_v33 }
 0x397   : > { %v1319_v34 = vpop.xlane.xlu1 %1318  ;;  %v1316_v50 = vpop.xlane.xlu0 %1315 }
 0x398   : > { %v1332_v51 = vsub.f32 %v4487_v41, %v1316_v50  ;;  %3967 = vpow2.f32 %v1341_v55  ;;  %v1333_v58 = vsub.f32 %v4493_v44, %v1319_v34 }
 0x399   : > { %3969 = vpow2.f32 %v1337_v30 }
 0x39a   : > { %v1343_v56 = vmul.f32 1.442695, %v1332_v51  ;;  %v1345_v10 = vmul.f32 1.442695, %v1333_v58 }
 0x39b   : > { %v1325_v61 = vpop.xlane.xlu1 %1324  ;;  %v1322_v36 = vpop.xlane.xlu0 %1321 }
 0x39c   : > { %v1335_v49 = vsub.f32 %v4491_v43, %v1325_v61  ;;  %3971 = vpow2.f32 %v1343_v56  ;;  %v1334_v42 = vsub.f32 %v4497_v48, %v1322_v36 }
 0x39d   : > { %3973 = vpow2.f32 %v1339_v57 }
 0x39e   : > { %v1349_v35 = vmul.f32 1.442695, %v1335_v49  ;;  %v1347_v44 = vmul.f32 1.442695, %v1334_v42 }
 0x39f   : > { %v1328_v17 = vpop.xlane.xlu0 %1327  ;;  %v1402_v0 = vpop.permute.xlu1 %1401 }
 0x3a0   : > { %3975 = vpow2.f32 %v1349_v35  ;;  %v1336_v41 = vsub.f32 %v4495_v45, %v1328_v17  ;;  %3663 = vmatprep.subr.bf16.mxu1 %v1402_v0 }
 0x3a1   : > { %3977 = vpow2.f32 %v1345_v10 }
 0x3a2   : > { %v1351_v2 = vmul.f32 1.442695, %v1336_v41  ;;  %v4622_v3 = vpop.eup %3967 }
 0x3a3   : > { %v1359_v43 = vsel %vm917_vm1, %v4622_v3, 0.0  ;;  %v4626_v4 = vpop.eup %3969 }
 0x3a4   : > { %3979 = vpow2.f32 %v1351_v2  ;;  %1360 = vadd.xlane.f32.xlu1 %v1359_v43  ;;  %v1353_v48 = vsel %vm917_vm1, %v4626_v4, 0.0 }
 0x3a5   : > { %3981 = vpow2.f32 %v1347_v44 }
 0x3a6   : > { %v4628_v6 = vpop.eup %3971 }
 0x3a7   : > { %v1362_v45 = vsel %vm917_vm1, %v4628_v6, 0.0  ;;  %v4634_v7 = vpop.eup %3973 }
 0x3a8   : > { %1354 = vadd.xlane.f32.xlu1 %v1353_v48  ;;  %1363 = vadd.xlane.f32.xlu0 %v1362_v45  ;;  %v1356_v26 = vsel %vm917_vm1, %v4634_v7, 0.0 }
 0x3aa   : > { %v4636_v31 = vpop.eup %3975 }
 0x3ab   : > { %v1371_v21 = vsel %vm917_vm1, %v4636_v31, 0.0  ;;  %v4642_v32 = vpop.eup %3977 }
 0x3ac   : > { %1372 = vadd.xlane.f32.xlu1 %v1371_v21  ;;  %1357 = vadd.xlane.f32.xlu0 %v1356_v26  ;;  %v1365_v14 = vsel %vm917_vm1, %v4642_v32, 0.0 }
 0x3ae   : > { %v4644_v9 = vpop.eup %3979 }
 0x3af   : > { %v1374_v11 = vsel %vm917_vm1, %v4644_v9, 0.0  ;;  %v4650_v15 = vpop.eup %3981 }
 0x3b0   : > { %1366 = vadd.xlane.f32.xlu1 %v1365_v14  ;;  %1375 = vadd.xlane.f32.xlu0 %v1374_v11  ;;  %v1368_v27 = vsel %vm917_vm1, %v4650_v15, 0.0 }
 0x3b4   : > { %1369 = vadd.xlane.f32.xlu0 %v1368_v27 }
 0x3c1   : > { %1405 = vrot.lane.b32.xlu1 %v4542_v5, %s4160_s21 }
 0x3c5   : > { %1407 = vrot.lane.b32.xlu1 %v4548_v8, %s4160_s21 }
 0x3c9   : > { %1996 = vrot.lane.b32.xlu1 %v4389_v25, %s4162_s19 }
 0x3ca   : > { %1403 = vrot.lane.b32.xlu0 %v4534_v59, %s4160_s21 }
 0x3cd   : > { %2000 = vrot.lane.b32.xlu1 %v4413_v53, %s4162_s19 }
 0x3ce   : > { %1994 = vrot.lane.b32.xlu0 %v4377_v13, %s4162_s19 }
 0x3d1   : > { %1988 = vrot.lane.b32.xlu1 %v4387_v24, %s4162_s19 }
 0x3d2   : > { %1998 = vrot.lane.b32.xlu0 %v4401_v38, %s4162_s19 }
 0x3d5   : > { %1992 = vrot.lane.b32.xlu1 %v4411_v52, %s4162_s19 }
 0x3d6   : > { %1986 = vrot.lane.b32.xlu0 %v4375_v12, %s4162_s19 }
 0x3da   : > { %1990 = vrot.lane.b32.xlu0 %v4399_v37, %s4162_s19 }
 0x42c   : > { %v3629_v25 = vpop.f32.mrb[8].mxu1 }
 0x42d   : > { %v1056_v53 = vpop.f32.mrb[9].mxu1 }
 0x42e   : > { %v3630_v47 = vpop.f32.mrb[10].mxu1 }
 0x42f   : > { %v1088_v16 = vpack.c.bf16 %v3630_v47, %v3629_v25  ;;  %v1059_v13 = vpop.f32.mrb[11].mxu1 }
 0x430   : > { %v1087_v19 = vpack.c.bf16 %v1059_v13, %v1056_v53 }
 0x431   : > { %v1361_v20 = vpop.xlane.xlu1 %1360 }
 0x432   : > { %3639 = vmatprep.mubr.msk.bf16.mxu1 %vm827_vm0, %v1087_v19 }
 0x433   : > { %3640 = vmatmul.mubr.msk.bf16.vlgmr.msra.gmra.mrb[16].mxu1 %vm827_vm0, %v1088_v16 }
 0x434   : > { %3664 = vmatpush3.bf16.msra.mxu1 %v1402_v0 }
 0x435   : > { %v1355_v38 = vpop.xlane.xlu1 %1354  ;;  %v1364_v52 = vpop.xlane.xlu0 %1363 }
 0x436   : > { %v3633_v24 = vpop.f32.mrb[12].mxu1  ;;  %3983 = vrcp.f32 %v1355_v38 }
 0x437   : > { %v1072_v46 = vpop.f32.mrb[13].mxu1 }
 0x438   : > { %v3634_v12 = vpop.f32.mrb[14].mxu1 }
 0x439   : > { %v1090_v22 = vpack.c.bf16 %v3634_v12, %v3633_v24  ;;  %v1075_v29 = vpop.f32.mrb[15].mxu1  ;;  %v1373_v23 = vpop.xlane.xlu1 %1372 }
 0x43a   : > { %v1089_v37 = vpack.c.bf16 %v1075_v29, %v1072_v46  ;;  %v1358_v39 = vpop.xlane.xlu0 %1357  ;;  %v3890_v29 = vld [vmem:[%s5295_s4 + $0x18] sm:$0xff]  }
 0x43b   : > { %3985 = vrcp.f32 %v1358_v39 }
 0x43c   : > { %3643 = vmatprep.mubr.msk.bf16.mxu1 %vm827_vm0, %v1089_v37  ;;  %3987 = vrcp.f32 %v1364_v52 }
 0x43d   : > { %3644 = vmatmul.mubr.msk.bf16.gmra.mrb[20].mxu1 %vm827_vm0, %v1090_v22  ;;  %v1367_v40 = vpop.xlane.xlu1 %1366  ;;  %3989 = vrcp.f32 %v1361_v20 }
 0x43e   : > { %v1376_v28 = vpop.xlane.xlu0 %1375 }
 0x440   : > { %v3984_v30 = vpop.eup %3983 }
 0x441   : > { %v1406_v54 = vpop.permute.xlu1 %1405  ;;  %v1385_v56 = vmul.f32 %v3984_v30, %v4626_v4 }
 0x442   : > { %v1370_v55 = vpop.xlane.xlu0 %1369 }
 0x443   : > { %3991 = vrcp.f32 %v1370_v55 }
 0x444   : > { %3993 = vrcp.f32 %v1367_v40 }
 0x445   : > { %v3986_v33 = vpop.eup %3985  ;;  %v1408_v50 = vpop.permute.xlu1 %1407  ;;  %3995 = vrcp.f32 %v1376_v28 }
 0x446   : > { %v1404_v34 = vpop.permute.xlu0 %1403  ;;  %v4680_v51 = vpop.f32.mrb[32].mxu0  ;;  %v1386_v57 = vmul.f32 %v3986_v33, %v4634_v7  ;;  %3997 = vrcp.f32 %v1373_v23 }
 0x447   : > { %3665 = vmatprep.subr.bf16.mxu1 %v1404_v34  ;;  %v4684_v58 = vpop.f32.mrb[33].mxu0  ;;  %v3988_v10 = vpop.eup %3987  ;;  %v1706_v48 = vsel %vm917_vm1, %v4680_v51, -inf }
 0x448   : > { %3666 = vmatpush3.bf16.msra.mxu1 %v1404_v34  ;;  %v4686_v61 = vpop.f32.mrb[34].mxu0  ;;  %v1700_v36 = vsel %vm917_vm1, %v4684_v58, -inf  ;;  %v1393_v49 = vpack.c.bf16 %v1386_v57, %v1385_v56  ;;  %v3990_v0 = vpop.eup %3989  ;;  %v1388_v4 = vmul.f32 %v3988_v10, %v4628_v6 }
 0x449   : > { %3667 = vmatprep.subr.bf16.mxu1 %v1406_v54  ;;  %v4690_v35 = vpop.f32.mrb[35].mxu0  ;;  %1701 = vmax.xlane.f32.xlu0 %v1700_v36  ;;  %v1997_v44 = vpop.permute.xlu1 %1996  ;;  %v1387_v11 = vmul.f32 %v3990_v0, %v4622_v3  ;;  %v1709_v47 = vsel %vm917_vm1, %v4686_v61, -inf }
 0x44a   : > { %3671 = vmatprep.mubr.msk.bf16.mxu1 %vm917_vm1, %v1393_v49  ;;  %v1995_v42 = vpop.permute.xlu0 %1994  ;;  %v1703_v17 = vsel %vm917_vm1, %v4690_v35, -inf  ;;  %v2018_v3 = vsel %vm827_vm0, %v1997_v44, 0 }
 0x44b   : > { %v2015_v41 = vsel %vm827_vm0, %v1995_v42, 0  ;;  %3823 = vmatprep.subr.msk.bf16.mxu0 %vm827_vm0, %v1995_v42  ;;  %1704 = vmax.xlane.f32.xlu1 %v1703_v17  ;;  %v1394_v53 = vpack.c.bf16 %v1388_v4, %v1387_v11 }
 0x44c   : > { %3668 = vmatpush3.bf16.msra.mxu1 %v1406_v54  ;;  %3736 = vmatpush3.bf16.xpose.msra.mxu0 %v2015_v41 }
 0x44d   : > { %v3992_v2 = vpop.eup %3991  ;;  %3669 = vmatprep.subr.bf16.mxu1 %v1408_v50  ;;  %3824 = vmatprep.subr.msk.bf16.mxu0 %vm827_vm0, %v1997_v44  ;;  %v2001_v22 = vpop.permute.xlu1 %2000 }
 0x44e   : > { %v3994_v43 = vpop.eup %3993  ;;  %v4701_v45 = vpop.f32.mrb[36].mxu0  ;;  %1707 = vmax.xlane.f32.xlu0 %v1706_v48  ;;  %v1390_v26 = vmul.f32 %v3992_v2, %v4650_v15 }
 0x44f   : > { %v1999_v7 = vpop.permute.xlu0 %1998  ;;  %v4703_v21 = vpop.f32.mrb[37].mxu0  ;;  %v1389_v25 = vmul.f32 %v3994_v43, %v4642_v32  ;;  %v1718_v32 = vsel %vm917_vm1, %v4701_v45, -inf }
 0x450   : > { %v4707_v14 = vpop.f32.mrb[38].mxu0  ;;  %v1712_v6 = vsel %vm917_vm1, %v4703_v21, -inf  ;;  %3670 = vmatpush3.bf16.msra.mxu1 %v1408_v50  ;;  %v3996_v16 = vpop.eup %3995  ;;  %v2021_v12 = vsel %vm827_vm0, %v1999_v7, 0 }
 0x451   : > { %v4711_v27 = vpop.f32.mrb[39].mxu0  ;;  %1713 = vmax.xlane.f32.xlu1 %v1712_v6  ;;  %v1395_v13 = vpack.c.bf16 %v1390_v26, %v1389_v25  ;;  %v3998_v19 = vpop.eup %3997  ;;  %v1392_v24 = vmul.f32 %v3996_v16, %v4644_v9  ;;  %v1721_v52 = vsel %vm917_vm1, %v4707_v14, -inf  ;;  %v3889_v9 = vld [vmem:[%s5295_s4 + $0x10] sm:$0xff]  }
 0x452   : > { %1710 = vmax.xlane.f32.xlu0 %v1709_v47  ;;  %v1715_v20 = vsel %vm917_vm1, %v4711_v27, -inf  ;;  %v1391_v38 = vmul.f32 %v3998_v19, %v4636_v31  ;;  %3679 = vmatprep.subr.bf16.mxu1 %v3889_v9  ;;  %v2024_v31 = vsel %vm827_vm0, %v2001_v22, 0  ;;  %v1989_v37 = vpop.permute.xlu1 %1988 }
 0x453   : > { %v1987_v15 = vpop.permute.xlu0 %1986  ;;  %3672 = vmatmul.mubr.msk.bf16.vlgmr.msra.gmra.mrb[24].mxu1 %vm917_vm1, %v1394_v53 }
 0x454   : > { %3743 = vmatprep.mubr.msk.bf16.mxu0 %vm827_vm0, %v1987_v15  ;;  %3675 = vmatprep.mubr.msk.bf16.mxu1 %vm917_vm1, %v1395_v13  ;;  %v1396_v46 = vpack.c.bf16 %v1392_v24, %v1391_v38 }
 0x455   : > { %3738 = vmatpush3.bf16.xpose.msra.mxu0 %v2018_v3  ;;  %1719 = vmax.xlane.f32.xlu1 %v1718_v32 }
 0x456   : > { %3825 = vmatprep.subr.msk.bf16.mxu0 %vm827_vm0, %v1999_v7  ;;  %1716 = vmax.xlane.f32.xlu0 %v1715_v20  ;;  %v1993_v39 = vpop.permute.xlu1 %1992 }
 0x457   : > { %3680 = vmatpush3.bf16.msra.mxu1 %v3889_v9  ;;  %v1991_v23 = vpop.permute.xlu0 %1990 }
 0x458   : > { %3681 = vmatprep.subr.bf16.mxu1 %v3890_v29 }
 0x45a   : > { %1722 = vmax.xlane.f32.xlu0 %v1721_v52 }
 0x45b   : > { %3676 = vmatmul.mubr.msk.bf16.gmra.mrb[28].mxu1 %vm917_vm1, %v1396_v46 }
 0x45c   : > { %3682 = vmatpush3.bf16.msra.mxu1 %v3890_v29 }
 0x45d   : > { %3740 = vmatpush3.bf16.xpose.msra.mxu0 %v2021_v12 }
 0x45e   : > { %3826 = vmatprep.subr.msk.bf16.mxu0 %vm827_vm0, %v2001_v22 }
 0x465   : > { %3742 = vmatpush3.bf16.xpose.msra.mxu0 %v2024_v31 }
 0x466   : > { %1792 = vrot.lane.b32.xlu1 %v4536_v60, %s4161_s10 }
 0x46c   : > { %3744 = vmatmul.mubr.msk.bf16.vlgmr.msra.gmra.mrb[40].mxu0 %vm827_vm0, %v1989_v37 }
 0x46d   : > { %3747 = vmatprep.mubr.msk.bf16.mxu0 %vm827_vm0, %v1991_v23 }
 0x474   : > { %3748 = vmatmul.mubr.msk.bf16.gmra.mrb[44].mxu0 %vm827_vm0, %v1993_v39 }
 0x475   : > { %2637 = vmatprep.mubr.bf16.mxu0 %v4159_v18 }
 0x4d6   : > { %v1702_v40 = vpop.xlane.xlu0 %1701 }
 0x4d7   : > { %v1724_v54 = vsub.f32 %v4684_v58, %v1702_v40 }
 0x4d8   : > { %v1705_v28 = vpop.xlane.xlu1 %1704 }
 0x4d9   : > { %v1732_v34 = vmul.f32 1.442695, %v1724_v54  ;;  %v1725_v50 = vsub.f32 %v4690_v35, %v1705_v28 }
 0x4db   : > { %v1708_v55 = vpop.xlane.xlu0 %1707  ;;  %v1734_v49 = vmul.f32 1.442695, %v1725_v50 }
 0x4dc   : > { %v1726_v30 = vsub.f32 %v4680_v51, %v1708_v55 }
 0x4de   : > { %v1714_v33 = vpop.xlane.xlu1 %1713  ;;  %v1736_v56 = vmul.f32 1.442695, %v1726_v30 }
 0x4df   : > { %v1711_v57 = vpop.xlane.xlu0 %1710  ;;  %v1728_v10 = vsub.f32 %v4703_v21, %v1714_v33 }
 0x4e0   : > { %3999 = vpow2.f32 %v1736_v56  ;;  %v1727_v36 = vsub.f32 %v4686_v61, %v1711_v57 }
 0x4e1   : > { %4001 = vpow2.f32 %v1732_v34  ;;  %v1740_v41 = vmul.f32 1.442695, %v1728_v10 }
 0x4e2   : > { %v1738_v42 = vmul.f32 1.442695, %v1727_v36  ;;  %v1720_v17 = vpop.xlane.xlu1 %1719 }
 0x4e3   : > { %v1730_v58 = vsub.f32 %v4701_v45, %v1720_v17  ;;  %v1717_v0 = vpop.xlane.xlu0 %1716 }
 0x4e4   : > { %4003 = vpow2.f32 %v1738_v42  ;;  %v1729_v35 = vsub.f32 %v4711_v27, %v1717_v0 }
 0x4e5   : > { %v1744_v51 = vmul.f32 1.442695, %v1730_v58  ;;  %4005 = vpow2.f32 %v1734_v49 }
 0x4e6   : > { %v1793_v2 = vpop.permute.xlu1 %1792  ;;  %v1742_v4 = vmul.f32 1.442695, %v1729_v35 }
 0x4e7   : > { %4007 = vpow2.f32 %v1744_v51  ;;  %v1723_v44 = vpop.xlane.xlu0 %1722  ;;  %3707 = vmatprep.subr.bf16.mxu1 %v1793_v2 }
 0x4e8   : > { %v1731_v61 = vsub.f32 %v4707_v14, %v1723_v44  ;;  %4009 = vpow2.f32 %v1740_v41 }
 0x4ea   : > { %v4753_v43 = vpop.eup %3999  ;;  %v1746_v48 = vmul.f32 1.442695, %v1731_v61 }
 0x4eb   : > { %v1754_v45 = vsel %vm917_vm1, %v4753_v43, 0.0  ;;  %v4757_v7 = vpop.eup %4001 }
 0x4ec   : > { %4011 = vpow2.f32 %v1746_v48  ;;  %1755 = vadd.xlane.f32.xlu1 %v1754_v45  ;;  %v1748_v26 = vsel %vm917_vm1, %v4757_v7, 0.0 }
 0x4ed   : > { %4013 = vpow2.f32 %v1742_v4 }
 0x4ee   : > { %v4759_v21 = vpop.eup %4003 }
 0x4ef   : > { %v1757_v11 = vsel %vm917_vm1, %v4759_v21, 0.0  ;;  %v4765_v14 = vpop.eup %4005 }
 0x4f0   : > { %1749 = vadd.xlane.f32.xlu1 %v1748_v26  ;;  %1758 = vadd.xlane.f32.xlu0 %v1757_v11  ;;  %v1751_v25 = vsel %vm917_vm1, %v4765_v14, 0.0 }
 0x4f1   : > { %v4767_v6 = vpop.eup %4007 }
 0x4f2   : > { %v1766_v27 = vsel %vm917_vm1, %v4767_v6, 0.0  ;;  %v4773_v53 = vpop.eup %4009 }
 0x4f3   : > { %v1760_v16 = vsel %vm917_vm1, %v4773_v53, 0.0 }
 0x4f4   : > { %1767 = vadd.xlane.f32.xlu1 %v1766_v27  ;;  %1752 = vadd.xlane.f32.xlu0 %v1751_v25 }
 0x4f6   : > { %v4775_v47 = vpop.eup %4011 }
 0x4f7   : > { %v1769_v15 = vsel %vm917_vm1, %v4775_v47, 0.0  ;;  %v4781_v13 = vpop.eup %4013 }
 0x4f8   : > { %1761 = vadd.xlane.f32.xlu1 %v1760_v16  ;;  %1770 = vadd.xlane.f32.xlu0 %v1769_v15  ;;  %v1763_v3 = vsel %vm917_vm1, %v4781_v13, 0.0 }
 0x4fc   : > { %1764 = vadd.xlane.f32.xlu0 %v1763_v3 }
 0x509   : > { %1796 = vrot.lane.b32.xlu1 %v4542_v5, %s4161_s10 }
 0x50d   : > { %1798 = vrot.lane.b32.xlu1 %v4548_v8, %s4161_s10 }
 0x512   : > { %1794 = vrot.lane.b32.xlu0 %v4534_v59, %s4161_s10 }
 0x526   : > { %v3673_v19 = vpop.f32.mrb[24].mxu1 }
 0x527   : > { %v1459_v32 = vpop.f32.mrb[25].mxu1 }
 0x528   : > { %v3674_v20 = vpop.f32.mrb[26].mxu1 }
 0x529   : > { %v1491_v24 = vpack.c.bf16 %v3674_v20, %v3673_v19  ;;  %v1462_v38 = vpop.f32.mrb[27].mxu1  ;;  %v3892_v20 = vld [vmem:[%s5295_s4 + $0x28] sm:$0xff]  }
 0x52a   : > { %v1490_v52 = vpack.c.bf16 %v1462_v38, %v1459_v32 }
 0x52c   : > { %3683 = vmatprep.mubr.msk.bf16.mxu1 %vm827_vm0, %v1490_v52 }
 0x52d   : > { %3684 = vmatmul.mubr.msk.bf16.vlgmr.msra.gmra.mrb[16].mxu1 %vm827_vm0, %v1491_v24 }
 0x52e   : > { %3708 = vmatpush3.bf16.msra.mxu1 %v1793_v2  ;;  %v3677_v46 = vpop.f32.mrb[28].mxu1 }
 0x52f   : > { %v1475_v12 = vpop.f32.mrb[29].mxu1 }
 0x530   : > { %v3678_v22 = vpop.f32.mrb[30].mxu1 }
 0x531   : > { %v1493_v9 = vpack.c.bf16 %v3678_v22, %v3677_v46  ;;  %v1478_v31 = vpop.f32.mrb[31].mxu1 }
 0x532   : > { %v1492_v29 = vpack.c.bf16 %v1478_v31, %v1475_v12 }
 0x534   : > { %3687 = vmatprep.mubr.msk.bf16.mxu1 %vm827_vm0, %v1492_v29 }
 0x535   : > { %3688 = vmatmul.mubr.msk.bf16.gmra.mrb[20].mxu1 %vm827_vm0, %v1493_v9 }
 0x53f   : > { %v4795_v37 = vpop.f32.mrb[40].mxu0 }
 0x540   : > { %v4797_v23 = vpop.f32.mrb[41].mxu0  ;;  %v2097_v55 = vsel %vm917_vm1, %v4795_v37, -inf }
 0x541   : > { %v4799_v39 = vpop.f32.mrb[42].mxu0  ;;  %v2091_v40 = vsel %vm917_vm1, %v4797_v23, -inf }
 0x542   : > { %v4803_v28 = vpop.f32.mrb[43].mxu0  ;;  %2092 = vmax.xlane.f32.xlu0 %v2091_v40  ;;  %v2100_v56 = vsel %vm917_vm1, %v4799_v39, -inf }
 0x543   : > { %v2094_v54 = vsel %vm917_vm1, %v4803_v28, -inf }
 0x544   : > { %2095 = vmax.xlane.f32.xlu1 %v2094_v54 }
 0x546   : > { %2098 = vmax.xlane.f32.xlu0 %v2097_v55 }
 0x547   : > { %v4809_v30 = vpop.f32.mrb[44].mxu0 }
 0x548   : > { %v4811_v33 = vpop.f32.mrb[45].mxu0  ;;  %v2109_v36 = vsel %vm917_vm1, %v4809_v30, -inf }
 0x549   : > { %v4813_v34 = vpop.f32.mrb[46].mxu0  ;;  %v2103_v50 = vsel %vm917_vm1, %v4811_v33, -inf }
 0x54a   : > { %v4819_v57 = vpop.f32.mrb[47].mxu0  ;;  %2104 = vmax.xlane.f32.xlu1 %v2103_v50  ;;  %2101 = vmax.xlane.f32.xlu0 %v2100_v56  ;;  %v2112_v10 = vsel %vm917_vm1, %v4813_v34, -inf }
 0x54b   : > { %v2106_v49 = vsel %vm917_vm1, %v4819_v57, -inf }
 0x54e   : > { %2110 = vmax.xlane.f32.xlu1 %v2109_v36  ;;  %2107 = vmax.xlane.f32.xlu0 %v2106_v49 }
 0x552   : > { %2113 = vmax.xlane.f32.xlu0 %v2112_v10 }
 0x55f   : > { %2183 = vrot.lane.b32.xlu1 %v4536_v60, %s4162_s19 }
 0x563   : > { %2185 = vrot.lane.b32.xlu1 %v4534_v59, %s4162_s19 }
 0x579   : > { %v1756_v42 = vpop.xlane.xlu1 %1755 }
 0x57d   : > { %v1750_v17 = vpop.xlane.xlu1 %1749  ;;  %v1759_v58 = vpop.xlane.xlu0 %1758 }
 0x57e   : > { %4015 = vrcp.f32 %v1750_v17 }
 0x581   : > { %v1768_v0 = vpop.xlane.xlu1 %1767  ;;  %v1753_v51 = vpop.xlane.xlu0 %1752 }
 0x582   : > { %4017 = vrcp.f32 %v1753_v51 }
 0x583   : > { %4019 = vrcp.f32 %v1759_v58 }
 0x584   : > { %4021 = vrcp.f32 %v1756_v42 }
 0x585   : > { %v1771_v41 = vpop.xlane.xlu0 %1770  ;;  %v1762_v35 = vpop.xlane.xlu1 %1761 }
 0x586   : > { %4023 = vrcp.f32 %v1762_v35 }
 0x588   : > { %v4016_v44 = vpop.eup %4015 }
 0x589   : > { %v1765_v2 = vpop.xlane.xlu0 %1764  ;;  %v1797_v60 = vpop.permute.xlu1 %1796  ;;  %v1780_v59 = vmul.f32 %v4016_v44, %v4757_v7  ;;  %v3891_v7 = vld [vmem:[%s5295_s4 + $0x20] sm:$0xff]  }
 0x58a   : > { %4025 = vrcp.f32 %v1765_v2 }
 0x58b   : > { %4027 = vrcp.f32 %v1771_v41 }
 0x58c   : > { %v4018_v61 = vpop.eup %4017  ;;  %4029 = vrcp.f32 %v1768_v0 }
 0x58d   : > { %v1795_v4 = vpop.permute.xlu0 %1794  ;;  %v1781_v48 = vmul.f32 %v4018_v61, %v4765_v14  ;;  %v4020_v26 = vpop.eup %4019 }
 0x58e   : > { %3709 = vmatprep.subr.bf16.mxu1 %v1795_v4  ;;  %v4022_v11 = vpop.eup %4021  ;;  %v1799_v25 = vpop.permute.xlu1 %1798  ;;  %v1783_v15 = vmul.f32 %v4020_v26, %v4759_v21 }
 0x58f   : > { %3710 = vmatpush3.bf16.msra.mxu1 %v1795_v4  ;;  %v1788_v45 = vpack.c.bf16 %v1781_v48, %v1780_v59  ;;  %v1782_v3 = vmul.f32 %v4022_v11, %v4753_v43 }
 0x590   : > { %3711 = vmatprep.subr.bf16.mxu1 %v1797_v60  ;;  %v4024_v27 = vpop.eup %4023 }
 0x591   : > { %3715 = vmatprep.mubr.msk.bf16.mxu1 %vm917_vm1, %v1788_v45  ;;  %v1784_v19 = vmul.f32 %v4024_v27, %v4773_v53  ;;  %v1789_v32 = vpack.c.bf16 %v1783_v15, %v1782_v3 }
 0x593   : > { %3712 = vmatpush3.bf16.msra.mxu1 %v1797_v60 }
 0x594   : > { %v4026_v16 = vpop.eup %4025  ;;  %3713 = vmatprep.subr.bf16.mxu1 %v1799_v25 }
 0x595   : > { %v1785_v14 = vmul.f32 %v4026_v16, %v4781_v13  ;;  %v4028_v24 = vpop.eup %4027 }
 0x596   : > { %v4030_v38 = vpop.eup %4029  ;;  %v1787_v13 = vmul.f32 %v4028_v24, %v4775_v47 }
 0x597   : > { %3714 = vmatpush3.bf16.msra.mxu1 %v1799_v25  ;;  %v1790_v21 = vpack.c.bf16 %v1785_v14, %v1784_v19  ;;  %v1786_v43 = vmul.f32 %v4030_v38, %v4767_v6 }
 0x598   : > { %3723 = vmatprep.subr.bf16.mxu1 %v3891_v7 }
 0x599   : > { %v1791_v53 = vpack.c.bf16 %v1787_v13, %v1786_v43 }
 0x59a   : > { %3716 = vmatmul.mubr.msk.bf16.vlgmr.msra.gmra.mrb[32].mxu1 %vm917_vm1, %v1789_v32 }
 0x59b   : > { %3719 = vmatprep.mubr.msk.bf16.mxu1 %vm917_vm1, %v1790_v21  ;;  %3724 = vmatpush3.bf16.msra.mxu1 %v3891_v7 }
 0x59c   : > { %3725 = vmatprep.subr.bf16.mxu1 %v3892_v20 }
 0x59f   : > { %3726 = vmatpush3.bf16.msra.mxu1 %v3892_v20 }
 0x5a2   : > { %3720 = vmatmul.mubr.msk.bf16.gmra.mrb[36].mxu1 %vm917_vm1, %v1791_v53 }
 0x5cf   : > { %v2093_v52 = vpop.xlane.xlu0 %2092 }
 0x5d0   : > { %v2115_v46 = vsub.f32 %v4797_v23, %v2093_v52 }
 0x5d1   : > { %v2096_v12 = vpop.xlane.xlu1 %2095 }
 0x5d2   : > { %v2123_v31 = vmul.f32 1.442695, %v2115_v46  ;;  %v2116_v40 = vsub.f32 %v4803_v28, %v2096_v12 }
 0x5d3   : > { %v2099_v22 = vpop.xlane.xlu0 %2098 }
 0x5d4   : > { %v2117_v9 = vsub.f32 %v4795_v37, %v2099_v22  ;;  %v2125_v50 = vmul.f32 1.442695, %v2116_v40 }
 0x5d6   : > { %v2127_v29 = vmul.f32 1.442695, %v2117_v9 }
 0x5d7   : > { %v2105_v54 = vpop.xlane.xlu1 %2104  ;;  %v2102_v47 = vpop.xlane.xlu0 %2101 }
 0x5d8   : > { %4031 = vpow2.f32 %v2127_v29  ;;  %v2118_v6 = vsub.f32 %v4799_v39, %v2102_v47  ;;  %v2119_v37 = vsub.f32 %v4811_v33, %v2105_v54 }
 0x5d9   : > { %4033 = vpow2.f32 %v2123_v31 }
 0x5da   : > { %v2129_v55 = vmul.f32 1.442695, %v2118_v6  ;;  %v2131_v17 = vmul.f32 1.442695, %v2119_v37 }
 0x5db   : > { %v2111_v56 = vpop.xlane.xlu1 %2110  ;;  %v2108_v36 = vpop.xlane.xlu0 %2107 }
 0x5dc   : > { %v2121_v23 = vsub.f32 %v4809_v30, %v2111_v56  ;;  %4035 = vpow2.f32 %v2129_v55  ;;  %v2120_v33 = vsub.f32 %v4819_v57, %v2108_v36 }
 0x5dd   : > { %4037 = vpow2.f32 %v2125_v50  ;;  %v3893_v50 = vld [vmem:[%s5295_s4 + $0x30] sm:$0xff]  }
 0x5de   : > { %v2135_v49 = vmul.f32 1.442695, %v2121_v23  ;;  %v2133_v2 = vmul.f32 1.442695, %v2120_v33 }
 0x5df   : > { %v2184_v10 = vpop.permute.xlu1 %2183  ;;  %v2114_v42 = vpop.xlane.xlu0 %2113 }
 0x5e0   : > { %3751 = vmatprep.subr.bf16.mxu1 %v2184_v10  ;;  %4039 = vpow2.f32 %v2135_v49  ;;  %v2122_v39 = vsub.f32 %v4813_v34, %v2114_v42  ;;  %v3894_v49 = vld [vmem:[%s5295_s4 + $0x38] sm:$0xff]  }
 0x5e1   : > { %4041 = vpow2.f32 %v2131_v17 }
 0x5e2   : > { %v4855_v28 = vpop.eup %4031  ;;  %v2137_v51 = vmul.f32 1.442695, %v2122_v39 }
 0x5e3   : > { %v2145_v58 = vsel %vm917_vm1, %v4855_v28, 0.0  ;;  %v4860_v0 = vpop.eup %4033  ;;  %v2186_v11 = vpop.permute.xlu1 %2185 }
 0x5e4   : > { %2146 = vadd.xlane.f32.xlu1 %v2145_v58  ;;  %v2139_v41 = vsel %vm917_vm1, %v4860_v0, 0.0  ;;  %4043 = vpow2.f32 %v2137_v51 }
 0x5e5   : > { %4045 = vpow2.f32 %v2133_v2 }
 0x5e6   : > { %v4862_v30 = vpop.eup %4035 }
 0x5e7   : > { %v2148_v35 = vsel %vm917_vm1, %v4862_v30, 0.0  ;;  %v4038_v34 = vpop.eup %4037 }
 0x5e8   : > { %2140 = vadd.xlane.f32.xlu1 %v2139_v41  ;;  %2149 = vadd.xlane.f32.xlu0 %v2148_v35  ;;  %v2142_v44 = vsel %vm917_vm1, %v4038_v34, 0.0 }
 0x5ea   : > { %v4870_v61 = vpop.eup %4039 }
 0x5eb   : > { %v2157_v57 = vsel %vm917_vm1, %v4870_v61, 0.0  ;;  %v4874_v60 = vpop.eup %4041 }
 0x5ec   : > { %2143 = vadd.xlane.f32.xlu0 %v2142_v44  ;;  %v2151_v4 = vsel %vm917_vm1, %v4874_v60, 0.0 }
 0x5ee   : > { %v4878_v59 = vpop.eup %4043 }
 0x5ef   : > { %v2160_v48 = vsel %vm917_vm1, %v4878_v59, 0.0  ;;  %v4882_v45 = vpop.eup %4045 }
 0x5f0   : > { %2158 = vadd.xlane.f32.xlu0 %v2157_v57  ;;  %v2154_v26 = vsel %vm917_vm1, %v4882_v45, 0.0 }
 0x5f4   : > { %2152 = vadd.xlane.f32.xlu0 %v2151_v4 }
 0x5f8   : > { %2161 = vadd.xlane.f32.xlu0 %v2160_v48  ;;  %v3341_v48 = vld [vmem:[%s5298_s7 + $0x3] ss:$0 sm:$0xff] }
 0x5f9   : > { %2189 = vrot.lane.b32.xlu1 %v4548_v8, %s4162_s19 }
 0x5fc   : > { %2155 = vadd.xlane.f32.xlu0 %v2154_v26 }
 0x612   : > { %2187 = vrot.lane.b32.xlu0 %v4542_v5, %s4162_s19 }
 0x66d   : > { %v3717_v27 = vpop.f32.mrb[32].mxu1 }
 0x66e   : > { %v1850_v25 = vpop.f32.mrb[33].mxu1 }
 0x66f   : > { %v3718_v16 = vpop.f32.mrb[34].mxu1 }
 0x670   : > { %v1882_v15 = vpack.c.bf16 %v3718_v16, %v3717_v27  ;;  %v1853_v7 = vpop.f32.mrb[35].mxu1  ;;  %v4128_v27 = vld [vmem:[%s4310_s11 + $0x8] sm:$0xff] }
 0x671   : > { %v2147_v14 = vpop.xlane.xlu1 %2146  ;;  %v1881_v3 = vpack.c.bf16 %v1853_v7, %v1850_v25  ;;  %v808_v25 = vadd.f32 %v4128_v27, %v3341_v48 }
 0x673   : > { %3727 = vmatprep.mubr.msk.bf16.mxu1 %vm827_vm0, %v1881_v3 }
 0x674   : > { %3728 = vmatmul.mubr.msk.bf16.vlgmr.msra.gmra.mrb[16].mxu1 %vm827_vm0, %v1882_v15  ;;  %v4129_v15 = vld [vmem:[%s4310_s11 + $0x10] sm:$0xff] }
 0x675   : > { %v2141_v8 = vpop.xlane.xlu1 %2140  ;;  %3752 = vmatpush3.bf16.msra.mxu1 %v2184_v10  ;;  %v2150_v19 = vpop.xlane.xlu0 %2149  ;;  %v809_v7 = vadd.f32 %v4129_v15, %v3341_v48  ;;  %v3903_v15 = vld [vmem:[%s5296_s5 + $0x24] ss:$8 sps:$4 sm:$0xff]  }
 0x676   : > { %v3721_v32 = vpop.f32.mrb[36].mxu1  ;;  %3753 = vmatprep.subr.bf16.mxu1 %v2186_v11  ;;  %4047 = vrcp.f32 %v2141_v8 }
 0x677   : > { %v1866_v20 = vpop.f32.mrb[37].mxu1 }
 0x678   : > { %v3722_v24 = vpop.f32.mrb[38].mxu1 }
 0x679   : > { %v1884_v5 = vpack.c.bf16 %v3722_v24, %v3721_v32  ;;  %v1869_v21 = vpop.f32.mrb[39].mxu1  ;;  %3754 = vmatpush3.bf16.msra.mxu1 %v2186_v11  ;;  %v2144_v13 = vpop.xlane.xlu0 %2143 }
 0x67a   : > { %v1883_v38 = vpack.c.bf16 %v1869_v21, %v1866_v20  ;;  %4049 = vrcp.f32 %v2144_v13  ;;  %v2190_v6 = vpop.permute.xlu1 %2189  ;;  %v4130_v20 = vld [vmem:[%s4310_s11 + $0x18] sm:$0xff]  ;;  %v4131_v21 = vld [vmem:[%s4310_s11 + $0x28] sm:$0xff] }
 0x67b   : > { %4051 = vrcp.f32 %v2150_v19  ;;  %v810_v24 = vadd.f32 %v4130_v20, %v3341_v48  ;;  %v3907_v20 = vld [vmem:[%s5296_s5 + $0x40] ss:$8 sps:$4 sm:$0xff]  }
 0x67c   : > { %3731 = vmatprep.mubr.msk.bf16.mxu1 %vm827_vm0, %v1883_v38  ;;  %4053 = vrcp.f32 %v2147_v14  ;;  %v812_v38 = vadd.f32 %v4131_v21, %v3341_v48  ;;  %v3915_v21 = vld [vmem:[%s5296_s5 + $0x64] ss:$8 sps:$4 sm:$0xff]  }
 0x67d   : > { %3732 = vmatmul.mubr.msk.bf16.gmra.mrb[20].mxu1 %vm827_vm0, %v1884_v5  ;;  %v2159_v43 = vpop.xlane.xlu0 %2158 }
 0x680   : > { %v4048_v52 = vpop.eup %4047 }
 0x681   : > { %v2153_v53 = vpop.xlane.xlu0 %2152  ;;  %v2171_v22 = vmul.f32 %v4048_v52, %v4860_v0 }
 0x682   : > { %4055 = vrcp.f32 %v2153_v53  ;;  %v4132_v53 = vld [vmem:[%s4310_s11 + $0x20] sm:$0xff] }
 0x683   : > { %v811_v52 = vadd.f32 %v4132_v53, %v3341_v48 }
 0x684   : > { %v4050_v46 = vpop.eup %4049 }
 0x685   : > { %v2162_v12 = vpop.xlane.xlu0 %2161  ;;  %v2172_v9 = vmul.f32 %v4050_v46, %v4038_v34  ;;  %v4052_v40 = vpop.eup %4051 }
 0x686   : > { %v4054_v47 = vpop.eup %4053  ;;  %v2174_v55 = vmul.f32 %v4052_v40, %v4862_v30 }
 0x687   : > { %v2179_v31 = vpack.c.bf16 %v2172_v9, %v2171_v22  ;;  %v2173_v36 = vmul.f32 %v4054_v47, %v4855_v28  ;;  %v4133_v22 = vld [vmem:[%s4310_s11 + $0x38] sm:$0xff] }
 0x688   : > { %v814_v9 = vadd.f32 %v4133_v22, %v3341_v48 }
 0x689   : > { %3759 = vmatprep.mubr.msk.bf16.mxu1 %vm917_vm1, %v2179_v31  ;;  %v2156_v29 = vpop.xlane.xlu0 %2155  ;;  %v2180_v37 = vpack.c.bf16 %v2174_v55, %v2173_v36  ;;  %v3895_v55 = vld [vmem:[%s5296_s5] ss:$8 sps:$4 sm:$0xff]   ;;  %v3898_v36 = vld [vmem:[%s5296_s5 + $0x10] ss:$8 sps:$4 sm:$0xff]  }
 0x68a   : > { %4057 = vrcp.f32 %v2156_v29  ;;  %v4134_v29 = vld [vmem:[%s4310_s11 + $0x30] sm:$0xff] }
 0x68b   : > { %4059 = vrcp.f32 %v2162_v12  ;;  %v813_v40 = vadd.f32 %v4134_v29, %v3341_v48 }
 0x68c   : > { %4061 = vrcp.f32 %v2159_v43  ;;  %v4056_v56 = vpop.eup %4055 }
 0x68d   : > { %v2188_v54 = vpop.permute.xlu0 %2187  ;;  %v2175_v42 = vmul.f32 %v4056_v56, %v4874_v60  ;;  %v3900_v56 = vld [vmem:[%s5296_s5 + $0x14] ss:$8 sps:$4 sm:$0xff]  }
 0x68e   : > { %3755 = vmatprep.subr.bf16.mxu1 %v2188_v54 }
 0x68f   : > { %3756 = vmatpush3.bf16.msra.mxu1 %v2188_v54 }
 0x690   : > { %3757 = vmatprep.subr.bf16.mxu1 %v2190_v6 }
 0x693   : > { %3758 = vmatpush3.bf16.msra.mxu1 %v2190_v6 }
 0x694   : > { %v4058_v23 = vpop.eup %4057  ;;  %3767 = vmatprep.subr.bf16.mxu1 %v3893_v50 }
 0x695   : > { %v4060_v10 = vpop.eup %4059  ;;  %v2176_v17 = vmul.f32 %v4058_v23, %v4882_v45  ;;  %v4127_v45 = vld [vmem:[%s4310_s11] sm:$0xff] }
 0x696   : > { %3760 = vmatmul.mubr.msk.bf16.vlgmr.msra.gmra.mrb[40].mxu1 %vm917_vm1, %v2180_v37  ;;  %v4062_v39 = vpop.eup %4061  ;;  %v2178_v28 = vmul.f32 %v4060_v10, %v4878_v59  ;;  %v807_v26 = vadd.f32 %v4127_v45, %v3341_v48 }
 0x697   : > { %v2181_v58 = vpack.c.bf16 %v2176_v17, %v2175_v42  ;;  %3768 = vmatpush3.bf16.msra.mxu1 %v3893_v50  ;;  %v2177_v0 = vmul.f32 %v4062_v39, %v4870_v61  ;;  %v3897_v50 = vld [vmem:[%s5296_s5 + $0x4] ss:$8 sps:$4 sm:$0xff]  }
 0x698   : > { %3769 = vmatprep.subr.bf16.mxu1 %v3894_v49  ;;  %2605 = vmatprep.subr.bf16.mxu0 %v3897_v50 }
 0x699   : > { %3763 = vmatprep.mubr.msk.bf16.mxu1 %vm917_vm1, %v2181_v58  ;;  %v2182_v30 = vpack.c.bf16 %v2178_v28, %v2177_v0  ;;  %2606 = vmatpush1.bf16.msra.mxu0 %v3895_v55 }
 0x69a   : > { %2607 = vmatprep.subr.bf16.mxu0 %v3900_v56 }
 0x69b   : > { %3770 = vmatpush3.bf16.msra.mxu1 %v3894_v49 }
 0x69d   : > { %2608 = vmatpush1.bf16.msra.mxu0 %v3898_v36 }
 0x69e   : > { %3764 = vmatmul.mubr.msk.bf16.gmra.mrb[44].mxu1 %vm917_vm1, %v2182_v30  ;;  %2609 = vmatprep.subr.bf16.mxu0 %v3903_v15 }
 0x769   : > { %v3761_v33 = vpop.f32.mrb[40].mxu1 }
 0x76a   : > { %v2241_v51 = vpop.f32.mrb[41].mxu1 }
 0x76b   : > { %v3762_v41 = vpop.f32.mrb[42].mxu1 }
 0x76c   : > { %v2273_v35 = vpack.c.bf16 %v3762_v41, %v3761_v33  ;;  %v2244_v34 = vpop.f32.mrb[43].mxu1 }
 0x76d   : > { %v2272_v2 = vpack.c.bf16 %v2244_v34, %v2241_v51 }
 0x76f   : > { %3771 = vmatprep.mubr.msk.bf16.mxu1 %vm827_vm0, %v2272_v2 }
 0x770   : > { %3772 = vmatmul.mubr.msk.bf16.vlgmr.msra.gmra.mrb[16].mxu1 %vm827_vm0, %v2273_v35 }
 0x771   : > { %v3765_v44 = vpop.f32.mrb[44].mxu1 }
 0x772   : > { %v2257_v57 = vpop.f32.mrb[45].mxu1 }
 0x773   : > { %v3766_v61 = vpop.f32.mrb[46].mxu1 }
 0x774   : > { %v2275_v60 = vpack.c.bf16 %v3766_v61, %v3765_v44  ;;  %v2260_v4 = vpop.f32.mrb[47].mxu1 }
 0x775   : > { %v2274_v59 = vpack.c.bf16 %v2260_v4, %v2257_v57 }
 0x777   : > { %3775 = vmatprep.mubr.msk.bf16.mxu1 %vm827_vm0, %v2274_v59 }
 0x778   : > { %3776 = vmatmul.mubr.msk.bf16.gmra.mrb[20].mxu1 %vm827_vm0, %v2275_v60 }
 0x843   : > { %v3773_v11 = vpop.f32.mrb[16].mxu1 }
 0x844   : > { %v2338_v16 = vpop.f32.mrb[17].mxu1  ;;  %v3779_v32 = vadd.f32 %v3773_v11, %v809_v7 }
 0x845   : > { %v3780_v14 = vadd.f32 %v2338_v16, %v807_v26  ;;  %v3774_v3 = vpop.f32.mrb[18].mxu1 }
 0x846   : > { %v2341_v8 = vpop.f32.mrb[19].mxu1  ;;  %v3781_v43 = vadd.f32 %v3774_v3, %v810_v24  ;;  %v3901_v3 = vld [vmem:[%s5296_s5 + $0x20] ss:$8 sps:$4 sm:$0xff]   ;;  %v3912_v24 = vld [vmem:[%s5296_s5 + $0x54] ss:$8 sps:$4 sm:$0xff]  }
 0x847   : > { %v3782_v19 = vadd.f32 %v2341_v8, %v808_v25  ;;  %2377 = vadd.xlane.f32.xlu1 %v3780_v14  ;;  %2610 = vmatpush1.bf16.msra.mxu0 %v3901_v3  ;;  %v3906_v8 = vld [vmem:[%s5296_s5 + $0x34] ss:$8 sps:$4 sm:$0xff]  }
 0x848   : > { %2611 = vmatprep.subr.bf16.mxu0 %v3906_v8 }
 0x849   : > { %2379 = vadd.xlane.f32.xlu0 %v3782_v19 }
 0x84b   : > { %2381 = vadd.xlane.f32.xlu1 %v3779_v32  ;;  %v3777_v5 = vpop.f32.mrb[20].mxu1 }
 0x84c   : > { %v2354_v13 = vpop.f32.mrb[21].mxu1  ;;  %v3783_v6 = vadd.f32 %v3777_v5, %v813_v40  ;;  %v3910_v5 = vld [vmem:[%s5296_s5 + $0x50] ss:$8 sps:$4 sm:$0xff]  }
 0x84d   : > { %v3778_v46 = vpop.f32.mrb[22].mxu1  ;;  %v3784_v54 = vadd.f32 %v2354_v13, %v811_v52  ;;  %v3918_v13 = vld [vmem:[%s5296_s5 + $0x74] ss:$8 sps:$4 sm:$0xff]  }
 0x84e   : > { %v2357_v12 = vpop.f32.mrb[23].mxu1  ;;  %v3785_v47 = vadd.f32 %v3778_v46, %v814_v9 }
 0x84f   : > { %v3786_v31 = vadd.f32 %v2357_v12, %v812_v38  ;;  %2383 = vadd.xlane.f32.xlu1 %v3781_v43  ;;  %v3913_v38 = vld [vmem:[%s5296_s5 + $0x60] ss:$8 sps:$4 sm:$0xff]  }
 0x851   : > { %2387 = vadd.xlane.f32.xlu0 %v3786_v31 }
 0x853   : > { %2385 = vadd.xlane.f32.xlu1 %v3784_v54 }
 0x855   : > { %2391 = vadd.xlane.f32.xlu0 %v3785_v47 }
 0x857   : > { %2389 = vadd.xlane.f32.xlu1 %v3783_v6 }
 0x8d4   : > { %v2378_v23 = vpop.xlane.xlu1 %2377 }
 0x8d5   : > { %v2394_v37 = vmul.f32 0.0078125, %v2378_v23 }
 0x8d6   : > { %v2380_v49 = vpop.xlane.xlu0 %2379 }
 0x8d7   : > { %v4938_v10 = vsub.f32 %v3780_v14, %v2394_v37  ;;  %v2395_v42 = vmul.f32 0.0078125, %v2380_v49  ;;  %v3398_v37 = vld [vmem:[%s5298_s7 + $0x7] ss:$0 sm:$0xff] }
 0x8d8   : > { %v2382_v17 = vpop.xlane.xlu1 %2381 }
 0x8d9   : > { %v4940_v39 = vsub.f32 %v3782_v19, %v2395_v42  ;;  %v2396_v58 = vmul.f32 0.0078125, %v2382_v17  ;;  %v2410_v28 = vmul.f32 %v4938_v10, %v4938_v10  ;;  %v3904_v19 = vld [vmem:[%s5296_s5 + $0x30] ss:$8 sps:$4 sm:$0xff]  }
 0x8da   : > { %2612 = vmatpush1.bf16.msra.mxu0 %v3904_v19 }
 0x8db   : > { %v4944_v0 = vsub.f32 %v3779_v32, %v2396_v58  ;;  %2418 = vadd.xlane.f32.xlu1 %v2410_v28  ;;  %v2411_v30 = vmul.f32 %v4940_v39, %v4940_v39  ;;  %v3909_v32 = vld [vmem:[%s5296_s5 + $0x44] ss:$8 sps:$4 sm:$0xff]  }
 0x8dc   : > { %v2384_v33 = vpop.xlane.xlu1 %2383  ;;  %2613 = vmatprep.subr.bf16.mxu0 %v3909_v32 }
 0x8dd   : > { %v2397_v51 = vmul.f32 0.0078125, %v2384_v33  ;;  %2420 = vadd.xlane.f32.xlu0 %v2411_v30  ;;  %v2412_v41 = vmul.f32 %v4944_v0, %v4944_v0 }
 0x8de   : > { %v2388_v35 = vpop.xlane.xlu0 %2387  ;;  %2614 = vmatpush1.bf16.msra.mxu0 %v3907_v20 }
 0x8df   : > { %v4950_v34 = vsub.f32 %v3781_v43, %v2397_v51  ;;  %v2399_v2 = vmul.f32 0.0078125, %v2388_v35  ;;  %2422 = vadd.xlane.f32.xlu1 %v2412_v41  ;;  %2615 = vmatprep.subr.bf16.mxu0 %v3912_v24  ;;  %v3916_v43 = vld [vmem:[%s5296_s5 + $0x70] ss:$8 sps:$4 sm:$0xff]  }
 0x8e0   : > { %v2386_v44 = vpop.xlane.xlu1 %2385 }
 0x8e1   : > { %v4952_v57 = vsub.f32 %v3786_v31, %v2399_v2  ;;  %v2398_v61 = vmul.f32 0.0078125, %v2386_v44  ;;  %v2413_v60 = vmul.f32 %v4950_v34, %v4950_v34 }
 0x8e2   : > { %v2392_v4 = vpop.xlane.xlu0 %2391  ;;  %2616 = vmatpush1.bf16.msra.mxu0 %v3910_v5 }
 0x8e3   : > { %v4956_v59 = vsub.f32 %v3784_v54, %v2398_v61  ;;  %v2401_v48 = vmul.f32 0.0078125, %v2392_v4  ;;  %2424 = vadd.xlane.f32.xlu0 %v2413_v60  ;;  %v2415_v25 = vmul.f32 %v4952_v57, %v4952_v57  ;;  %2617 = vmatprep.subr.bf16.mxu0 %v3915_v21  ;;  %v3399_v60 = vld [vmem:[%s5298_s7 + $0x8] ss:$0 sm:$0xff] }
 0x8e4   : > { %v2390_v45 = vpop.xlane.xlu1 %2389 }
 0x8e5   : > { %v4958_v26 = vsub.f32 %v3785_v47, %v2401_v48  ;;  %v2400_v11 = vmul.f32 0.0078125, %v2390_v45  ;;  %v2414_v27 = vmul.f32 %v4956_v59, %v4956_v59 }
 0x8e6   : > { %2618 = vmatpush1.bf16.msra.mxu0 %v3913_v38 }
 0x8e7   : > { %v4964_v16 = vsub.f32 %v3783_v6, %v2400_v11  ;;  %2426 = vadd.xlane.f32.xlu1 %v2414_v27  ;;  %2428 = vadd.xlane.f32.xlu0 %v2415_v25  ;;  %v2417_v14 = vmul.f32 %v4958_v26, %v4958_v26 }
 0x8e8   : > { %2619 = vmatprep.subr.bf16.mxu0 %v3918_v13 }
 0x8e9   : > { %v2416_v7 = vmul.f32 %v4964_v16, %v4964_v16 }
 0x8ea   : > { %2620 = vmatpush1.bf16.msra.mxu0 %v3916_v43 }
 0x8eb   : > { %2430 = vadd.xlane.f32.xlu1 %v2416_v7  ;;  %2432 = vadd.xlane.f32.xlu0 %v2417_v14 }
 0x968   : > { %v2419_v53 = vpop.xlane.xlu1 %2418 }
 0x969   : > { %v2434_v52 = vmul.f32 0.0078125, %v2419_v53 }
 0x96a   : > { %v2421_v46 = vpop.xlane.xlu0 %2420 }
 0x96b   : > { %v2442_v12 = vadd.f32 1e-05, %v2434_v52  ;;  %v2435_v22 = vmul.f32 0.0078125, %v2421_v46 }
 0x96c   : > { %v2423_v9 = vpop.xlane.xlu1 %2422 }
 0x96d   : > { %4063 = vrsqrt.f32 %v2442_v12  ;;  %v2443_v31 = vadd.f32 1e-05, %v2435_v22  ;;  %v2436_v29 = vmul.f32 0.0078125, %v2423_v9  ;;  %v3922_v22 = vld [vmem:[%s5297_s6 + $0x8] sm:$0xff]   ;;  %v3923_v9 = vld [vmem:[%s5297_s6 + $0x50] sm:$0xff]  }
 0x96f   : > { %4065 = vrsqrt.f32 %v2443_v31  ;;  %v2444_v40 = vadd.f32 1e-05, %v2436_v29  ;;  %v3924_v31 = vld [vmem:[%s5297_s6 + $0x10] sm:$0xff]   ;;  %v3925_v29 = vld [vmem:[%s5297_s6 + $0x58] sm:$0xff]  }
 0x970   : > { %v2425_v54 = vpop.xlane.xlu0 %2424 }
 0x971   : > { %4067 = vrsqrt.f32 %v2444_v40  ;;  %v2437_v47 = vmul.f32 0.0078125, %v2425_v54  ;;  %v3926_v40 = vld [vmem:[%s5297_s6 + $0x18] sm:$0xff]   ;;  %v3927_v54 = vld [vmem:[%s5297_s6 + $0x60] sm:$0xff]  }
 0x973   : > { %v2445_v6 = vadd.f32 1e-05, %v2437_v47  ;;  %v3928_v47 = vld [vmem:[%s5297_s6 + $0x20] sm:$0xff]  }
 0x974   : > { %v2427_v55 = vpop.xlane.xlu1 %2426  ;;  %v2429_v50 = vpop.xlane.xlu0 %2428 }
 0x975   : > { %4069 = vrsqrt.f32 %v2445_v6  ;;  %v2438_v56 = vmul.f32 0.0078125, %v2427_v55  ;;  %v2439_v36 = vmul.f32 0.0078125, %v2429_v50  ;;  %v3929_v6 = vld [vmem:[%s5297_s6 + $0x68] sm:$0xff]   ;;  %v3931_v50 = vld [vmem:[%s5297_s6 + $0x70] sm:$0xff]  }
 0x976   : > { %v3930_v55 = vld [vmem:[%s5297_s6 + $0x28] sm:$0xff]  }
 0x977   : > { %v4064_v23 = vpop.eup %4063  ;;  %v2446_v49 = vadd.f32 1e-05, %v2438_v56  ;;  %v2447_v42 = vadd.f32 1e-05, %v2439_v36  ;;  %v3932_v56 = vld [vmem:[%s5297_s6 + $0x30] sm:$0xff]   ;;  %v3933_v36 = vld [vmem:[%s5297_s6 + $0x78] sm:$0xff]  }
 0x978   : > { %v2458_v17 = vmul.f32 %v4064_v23, %v4938_v10  ;;  %v2431_v58 = vpop.xlane.xlu1 %2430  ;;  %v2433_v28 = vpop.xlane.xlu0 %2432  ;;  %v3934_v23 = vld [vmem:[%s5297_s6 + $0x38] sm:$0xff]  }
 0x979   : > { %v4066_v30 = vpop.eup %4065  ;;  %4071 = vrsqrt.f32 %v2446_v49  ;;  %v2440_v33 = vmul.f32 0.0078125, %v2431_v58  ;;  %v2441_v51 = vmul.f32 0.0078125, %v2433_v28 }
 0x97a   : > { %v2472_v41 = vmul.f32 %v3398_v37, %v2458_v17  ;;  %v2459_v35 = vmul.f32 %v4066_v30, %v4940_v39  ;;  %4073 = vrsqrt.f32 %v2447_v42 }
 0x97b   : > { %v4068_v2 = vpop.eup %4067  ;;  %v2448_v44 = vadd.f32 1e-05, %v2440_v33  ;;  %v2449_v61 = vadd.f32 1e-05, %v2441_v51 }
 0x97c   : > { %v2473_v4 = vmul.f32 %v3398_v37, %v2459_v35  ;;  %v5014_v10 = vadd.f32 %v3399_v60, %v2472_v41  ;;  %v2460_v45 = vmul.f32 %v4068_v2, %v4944_v0 }
 0x97d   : > { %4075 = vrsqrt.f32 %v2448_v44 }
 0x97e   : > { %v5016_v48 = vadd.f32 %v3399_v60, %v2473_v4  ;;  %4077 = vrsqrt.f32 %v2449_v61  ;;  %v2474_v25 = vmul.f32 %v3398_v37, %v2460_v45 }
 0x97f   : > { %v4070_v11 = vpop.eup %4069 }
 0x980   : > { %v2494_v39 = vpack.c.bf16 %v5016_v48, %v5014_v10  ;;  %v2461_v27 = vmul.f32 %v4070_v11, %v4950_v34  ;;  %v5027_v19 = vadd.f32 %v3399_v60, %v2474_v25 }
 0x982   : > { %2638 = vmatmul.mubr.bf16.vlgmr.msra.gmra.mrb[48].mxu0 %v2494_v39  ;;  %v2475_v15 = vmul.f32 %v3398_v37, %v2461_v27 }
 0x983   : > { %v4072_v7 = vpop.eup %4071  ;;  %2647 = vmatprep.mubr.bf16.mxu0 %v4159_v18 }
 0x984   : > { %v4074_v14 = vpop.eup %4073  ;;  %v5023_v3 = vadd.f32 %v3399_v60, %v2475_v15  ;;  %v2462_v8 = vmul.f32 %v4072_v7, %v4956_v59 }
 0x985   : > { %v2463_v0 = vmul.f32 %v4074_v14, %v4952_v57 }
 0x986   : > { %v2495_v20 = vpack.c.bf16 %v5023_v3, %v5027_v19  ;;  %v2476_v34 = vmul.f32 %v3398_v37, %v2462_v8 }
 0x987   : > { %v4076_v32 = vpop.eup %4075  ;;  %v2477_v24 = vmul.f32 %v3398_v37, %v2463_v0 }
 0x988   : > { %v4078_v5 = vpop.eup %4077  ;;  %v5032_v21 = vadd.f32 %v3399_v60, %v2476_v34  ;;  %v2464_v59 = vmul.f32 %v4076_v32, %v4964_v16  ;;  %v3920_v16 = vld [vmem:[%s5297_s6] sm:$0xff]  }
 0x989   : > { %v5034_v38 = vadd.f32 %v3399_v60, %v2477_v24  ;;  %v2465_v57 = vmul.f32 %v4078_v5, %v4958_v26  ;;  %v3919_v26 = vld [vmem:[%s5297_s6 + $0x40] sm:$0xff]  }
 0x98a   : > { %2648 = vmatmul.mubr.bf16.gmra.mrb[52].mxu0 %v2495_v20  ;;  %v2478_v43 = vmul.f32 %v3398_v37, %v2464_v59  ;;  %3539 = vmatprep.subr.bf16.mxu1 %v3919_v26 }
 0x98b   : > { %2657 = vmatprep.mubr.bf16.mxu0 %v4159_v18  ;;  %v2496_v13 = vpack.c.bf16 %v5034_v38, %v5032_v21  ;;  %v2479_v53 = vmul.f32 %v3398_v37, %v2465_v57  ;;  %3540 = vmatpush3.bf16.msra.mxu1 %v3920_v16  ;;  %v448_v37 = vld [vmem:[%s5298_s7 + $0x4] sm:$0x3] }
 0x98c   : > { %v5041_v52 = vadd.f32 %v3399_v60, %v2478_v43  ;;  %v5100_v49 = vrot.slane %v448_v37, %v505_v63  ;;  %v5104_v42 = vrot.slane %v448_v37, %v509_v1 }
 0x98d   : > { %v5043_v46 = vadd.f32 %v3399_v60, %v2479_v53 }
 0x98f   : > { %v2497_v12 = vpack.c.bf16 %v5043_v46, %v5041_v52 }
 0x992   : > { %2658 = vmatmul.mubr.bf16.gmra.mrb[56].mxu0 %v2496_v13 }
 0x993   : > { %2667 = vmatprep.mubr.bf16.mxu0 %v4159_v18  ;;  %v3921_v18 = vld [vmem:[%s5297_s6 + $0x48] sm:$0xff]  }
 0x994   : > { %3541 = vmatprep.subr.bf16.mxu1 %v3921_v18 }
 0x995   : > { %3542 = vmatpush3.bf16.msra.mxu1 %v3922_v22 }
 0x996   : > { %3543 = vmatprep.subr.bf16.mxu1 %v3923_v9 }
 0x999   : > { %3544 = vmatpush3.bf16.msra.mxu1 %v3924_v31 }
 0x99a   : > { %2668 = vmatmul.mubr.bf16.gmra.mrb[60].mxu0 %v2497_v12  ;;  %3545 = vmatprep.subr.bf16.mxu1 %v3925_v29 }
 0x99d   : > { %3546 = vmatpush3.bf16.msra.mxu1 %v3926_v40 }
 0x99e   : > { %3547 = vmatprep.subr.bf16.mxu1 %v3927_v54 }
 0x9a1   : > { %3548 = vmatpush3.bf16.msra.mxu1 %v3928_v47 }
 0x9a2   : > { %3549 = vmatprep.subr.bf16.mxu1 %v3929_v6 }
 0x9a5   : > { %3550 = vmatpush3.bf16.msra.mxu1 %v3930_v55 }
 0x9a6   : > { %3551 = vmatprep.subr.bf16.mxu1 %v3931_v50 }
 0x9a9   : > { %3552 = vmatpush3.bf16.msra.mxu1 %v3932_v56 }
 0x9aa   : > { %3553 = vmatprep.subr.bf16.mxu1 %v3933_v36 }
 0x9ad   : > { %3554 = vmatpush3.bf16.msra.mxu1 %v3934_v23 }
 0xa55   : > { %v2639_v17 = vpop.f32.mrb[48].mxu0 }
 0xa56   : > { %v2640_v58 = vadd.f32 %v2639_v17, %v5100_v49  ;;  %v2641_v28 = vpop.f32.mrb[49].mxu0 }
 0xa57   : > { %v2642_v30 = vadd.f32 %v2641_v28, %v5104_v42  ;;  %v2643_v33 = vpop.f32.mrb[50].mxu0 }
 0xa58   : > { %v2694_v51 = vmul.f32 0.044715, %v2640_v58  ;;  %v5109_v41 = vadd.f32 %v2643_v33, %v5100_v49  ;;  %v2645_v35 = vpop.f32.mrb[51].mxu0  ;;  %v2678_v6 = vmul.f32 0.5, %v2640_v58 }
 0xa59   : > { %v2695_v2 = vmul.f32 0.044715, %v2642_v30  ;;  %v5112_v63 = vadd.f32 %v2645_v35, %v5104_v42  ;;  %v2679_v35 = vmul.f32 0.5, %v2642_v30 }
 0xa5a   : > { %v2710_v44 = vmul.f32 %v2694_v51, %v2640_v58  ;;  %v2696_v62 = vmul.f32 0.044715, %v5109_v41 }
 0xa5b   : > { %v2711_v1 = vmul.f32 %v2695_v2, %v2642_v30  ;;  %v2697_v61 = vmul.f32 0.044715, %v5112_v63 }
 0xa5c   : > { %v2726_v60 = vmul.f32 %v2710_v44, %v2640_v58  ;;  %v2712_v4 = vmul.f32 %v2696_v62, %v5109_v41 }
 0xa5d   : > { %v2727_v45 = vmul.f32 %v2711_v1, %v2642_v30  ;;  %v2713_v11 = vmul.f32 %v2697_v61, %v5112_v63  ;;  %v2649_v39 = vpop.f32.mrb[52].mxu0 }
 0xa5e   : > { %v2742_v27 = vadd.f32 %v2726_v60, %v2640_v58  ;;  %v2728_v25 = vmul.f32 %v2712_v4, %v5109_v41  ;;  %v5120_v15 = vadd.f32 %v2649_v39, %v5100_v49  ;;  %v2651_v7 = vpop.f32.mrb[53].mxu0 }
 0xa5f   : > { %v2729_v14 = vmul.f32 %v2713_v11, %v5112_v63  ;;  %v2652_v8 = vadd.f32 %v2651_v7, %v5104_v42  ;;  %v2653_v0 = vpop.f32.mrb[54].mxu0  ;;  %v2743_v32 = vadd.f32 %v2727_v45, %v2642_v30  ;;  %v2680_v7 = vmul.f32 0.5, %v5109_v41 }
 0xa60   : > { %v2758_v20 = vmul.f32 0.7978846, %v2742_v27  ;;  %v2744_v34 = vadd.f32 %v2728_v25, %v5109_v41  ;;  %v2698_v24 = vmul.f32 0.044715, %v5120_v15  ;;  %v5127_v5 = vadd.f32 %v2653_v0, %v5100_v49  ;;  %v2655_v59 = vpop.f32.mrb[55].mxu0 }
 0xa61   : > { %v2699_v57 = vmul.f32 0.044715, %v2652_v8  ;;  %v5130_v13 = vadd.f32 %v2655_v59, %v5104_v42  ;;  %v2745_v43 = vadd.f32 %v2729_v14, %v5112_v63  ;;  %v2759_v53 = vmul.f32 0.7978846, %v2743_v32 }
 0xa62   : > { %4079 = vtanh.f32 %v2758_v20  ;;  %v2760_v12 = vmul.f32 0.7978846, %v2744_v34  ;;  %v2714_v26 = vmul.f32 %v2698_v24, %v5120_v15  ;;  %v2700_v16 = vmul.f32 0.044715, %v5127_v5 }
 0xa63   : > { %v2715_v18 = vmul.f32 %v2699_v57, %v2652_v8  ;;  %v2701_v22 = vmul.f32 0.044715, %v5130_v13  ;;  %v2761_v9 = vmul.f32 0.7978846, %v2745_v43  ;;  %4081 = vtanh.f32 %v2759_v53 }
 0xa64   : > { %4083 = vtanh.f32 %v2760_v12  ;;  %v2730_v31 = vmul.f32 %v2714_v26, %v5120_v15  ;;  %v2716_v29 = vmul.f32 %v2700_v16, %v5127_v5  ;;  %v2681_v0 = vmul.f32 0.5, %v5112_v63 }
 0xa65   : > { %v2731_v40 = vmul.f32 %v2715_v18, %v2652_v8  ;;  %v2717_v54 = vmul.f32 %v2701_v22, %v5130_v13  ;;  %v2659_v47 = vpop.f32.mrb[56].mxu0  ;;  %4085 = vtanh.f32 %v2761_v9  ;;  %v2683_v59 = vmul.f32 0.5, %v2652_v8 }
 0xa66   : > { %v2732_v55 = vmul.f32 %v2716_v29, %v5127_v5  ;;  %v5141_v50 = vadd.f32 %v2659_v47, %v5100_v49  ;;  %v2661_v56 = vpop.f32.mrb[57].mxu0  ;;  %v2746_v28 = vadd.f32 %v2730_v31, %v5120_v15 }
 0xa67   : > { %v2733_v36 = vmul.f32 %v2717_v54, %v5130_v13  ;;  %v5145_v23 = vadd.f32 %v2661_v56, %v5104_v42  ;;  %v2663_v37 = vpop.f32.mrb[58].mxu0  ;;  %v2747_v17 = vadd.f32 %v2731_v40, %v2652_v8 }
 0xa68   : > { %v2702_v33 = vmul.f32 0.044715, %v5141_v50  ;;  %v5150_v51 = vadd.f32 %v2663_v37, %v5100_v49  ;;  %v2665_v58 = vpop.f32.mrb[59].mxu0  ;;  %v2748_v2 = vadd.f32 %v2732_v55, %v5127_v5  ;;  %v2762_v45 = vmul.f32 0.7978846, %v2746_v28 }
 0xa69   : > { %v2703_v44 = vmul.f32 0.044715, %v5145_v23  ;;  %v5155_v62 = vadd.f32 %v2665_v58, %v5104_v42  ;;  %v2749_v1 = vadd.f32 %v2733_v36, %v5130_v13  ;;  %v2763_v61 = vmul.f32 0.7978846, %v2747_v17 }
 0xa6a   : > { %v2718_v60 = vmul.f32 %v2702_v33, %v5141_v50  ;;  %v2704_v4 = vmul.f32 0.044715, %v5150_v51  ;;  %v2764_v11 = vmul.f32 0.7978846, %v2748_v2 }
 0xa6b   : > { %v2719_v39 = vmul.f32 %v2703_v44, %v5145_v23  ;;  %v2705_v30 = vmul.f32 0.044715, %v5155_v62  ;;  %v2765_v27 = vmul.f32 0.7978846, %v2749_v1  ;;  %4087 = vtanh.f32 %v2763_v61 }
 0xa6c   : > { %v4080_v25 = vpop.eup %4079  ;;  %v2720_v14 = vmul.f32 %v2704_v4, %v5150_v51  ;;  %4089 = vtanh.f32 %v2762_v45  ;;  %v2734_v63 = vmul.f32 %v2718_v60, %v5141_v50  ;;  %v2682_v45 = vmul.f32 0.5, %v5120_v15 }
 0xa6d   : > { %v4082_v32 = vpop.eup %4081  ;;  %v2721_v20 = vmul.f32 %v2705_v30, %v5155_v62  ;;  %v2669_v34 = vpop.f32.mrb[60].mxu0  ;;  %v2790_v24 = vadd.f32 1.0, %v4080_v25  ;;  %4091 = vtanh.f32 %v2765_v27  ;;  %v2735_v43 = vmul.f32 %v2719_v39, %v5145_v23 }
 0xa6e   : > { %v4084_v57 = vpop.eup %4083  ;;  %v5168_v53 = vadd.f32 %v2669_v34, %v5100_v49  ;;  %v2671_v12 = vpop.f32.mrb[61].mxu0  ;;  %v2791_v41 = vadd.f32 1.0, %v4082_v32  ;;  %4093 = vtanh.f32 %v2764_v11  ;;  %v2736_v9 = vmul.f32 %v2720_v14, %v5150_v51 }
 0xa6f   : > { %v4086_v26 = vpop.eup %4085  ;;  %v2737_v16 = vmul.f32 %v2721_v20, %v5155_v62  ;;  %v5173_v18 = vadd.f32 %v2671_v12, %v5104_v42  ;;  %v2673_v22 = vpop.f32.mrb[62].mxu0  ;;  %v2792_v8 = vadd.f32 1.0, %v4084_v57  ;;  %v2806_v56 = vmul.f32 %v2790_v24, %v2678_v6 }
 0xa70   : > { %v2706_v31 = vmul.f32 0.044715, %v5168_v53  ;;  %v5178_v29 = vadd.f32 %v2673_v22, %v5100_v49  ;;  %v2675_v40 = vpop.f32.mrb[63].mxu0  ;;  %v2793_v54 = vadd.f32 1.0, %v4086_v26  ;;  %v2807_v17 = vmul.f32 %v2791_v41, %v2679_v35 }
 0xa71   : > { %v2707_v47 = vmul.f32 0.044715, %v5173_v18  ;;  %v5182_v55 = vadd.f32 %v2675_v40, %v5104_v42  ;;  %v2808_v36 = vmul.f32 %v2792_v8, %v2680_v7  ;;  %v2751_v33 = vadd.f32 %v2735_v43, %v5145_v23 }
 0xa72   : > { %v2708_v37 = vmul.f32 0.044715, %v5178_v29  ;;  %v2809_v28 = vmul.f32 %v2793_v54, %v2681_v0  ;;  %v2753_v44 = vadd.f32 %v2737_v16, %v5155_v62  ;;  %v2722_v1 = vmul.f32 %v2706_v31, %v5168_v53 }
 0xa73   : > { %v2723_v58 = vmul.f32 %v2707_v47, %v5173_v18  ;;  %v2709_v49 = vmul.f32 0.044715, %v5182_v55  ;;  %v2822_v2 = vpack.c.bf16 %v2808_v36, %v2806_v56  ;;  %v2685_v42 = vmul.f32 0.5, %v5130_v13 }
 0xa74   : > { %v2823_v61 = vpack.c.bf16 %v2809_v28, %v2807_v17  ;;  %v2767_v6 = vmul.f32 0.7978846, %v2751_v33  ;;  %v2724_v4 = vmul.f32 %v2708_v37, %v5178_v29  ;;  %v2769_v11 = vmul.f32 0.7978846, %v2753_v44 }
 0xa75   : > { %v4088_v60 = vpop.eup %4087  ;;  %v2725_v35 = vmul.f32 %v2709_v49, %v5182_v55  ;;  %v2739_v30 = vmul.f32 %v2723_v58, %v5173_v18  ;;  %v2750_v25 = vadd.f32 %v2734_v63, %v5141_v50  ;;  %v2752_v0 = vadd.f32 %v2736_v9, %v5150_v51 }
 0xa76   : > { %v4090_v39 = vpop.eup %4089  ;;  %2996 = vmatprep.mubr.bf16.mxu1 %v2823_v61  ;;  %v2795_v27 = vadd.f32 1.0, %v4088_v60  ;;  %4095 = vtanh.f32 %v2767_v6  ;;  %v2738_v15 = vmul.f32 %v2722_v1, %v5168_v53  ;;  %v2684_v34 = vmul.f32 0.5, %v5127_v5 }
 0xa77   : > { %v4092_v7 = vpop.eup %4091  ;;  %v2741_v13 = vmul.f32 %v2725_v35, %v5182_v55  ;;  %2997 = vmatmul.mubr.bf16.vlgmr.msra.gmra.mrb[48].mxu1 %v2822_v2  ;;  %v2794_v14 = vadd.f32 1.0, %v4090_v39  ;;  %4097 = vtanh.f32 %v2769_v11  ;;  %v2766_v24 = vmul.f32 0.7978846, %v2750_v25 }
 0xa78   : > { %v4094_v32 = vpop.eup %4093  ;;  %v2797_v20 = vadd.f32 1.0, %v4092_v7  ;;  %v2740_v57 = vmul.f32 %v2724_v4, %v5178_v29  ;;  %v2811_v43 = vmul.f32 %v2795_v27, %v2683_v59  ;;  %v2768_v41 = vmul.f32 0.7978846, %v2752_v0 }
 0xa79   : > { %v2796_v12 = vadd.f32 1.0, %v4094_v32  ;;  %4099 = vtanh.f32 %v2766_v24  ;;  %v2755_v63 = vadd.f32 %v2739_v30, %v5173_v18  ;;  %v2757_v16 = vadd.f32 %v2741_v13, %v5182_v55 }
 0xa7a   : > { %v2813_v26 = vmul.f32 %v2797_v20, %v2685_v42  ;;  %v2810_v22 = vmul.f32 %v2794_v14, %v2682_v45  ;;  %4101 = vtanh.f32 %v2768_v41  ;;  %v2754_v5 = vadd.f32 %v2738_v15, %v5168_v53 }
 0xa7b   : > { %v2812_v8 = vmul.f32 %v2796_v12, %v2684_v34  ;;  %v2771_v31 = vmul.f32 0.7978846, %v2755_v63  ;;  %v2773_v40 = vmul.f32 0.7978846, %v2757_v16  ;;  %v2756_v47 = vadd.f32 %v2740_v57, %v5178_v29 }
 0xa7c   : > { %v2825_v9 = vpack.c.bf16 %v2813_v26, %v2811_v43  ;;  %v2770_v59 = vmul.f32 0.7978846, %v2754_v5  ;;  %v2687_v28 = vmul.f32 0.5, %v5145_v23  ;;  %v2689_v33 = vmul.f32 0.5, %v5155_v62 }
 0xa7d   : > { %v2824_v54 = vpack.c.bf16 %v2812_v8, %v2810_v22  ;;  %4103 = vtanh.f32 %v2771_v31  ;;  %v2772_v56 = vmul.f32 0.7978846, %v2756_v47  ;;  %v2686_v6 = vmul.f32 0.5, %v5141_v50 }
 0xa7e   : > { %3004 = vmatprep.mubr.bf16.mxu1 %v2825_v9  ;;  %4105 = vtanh.f32 %v2773_v40  ;;  %v2688_v60 = vmul.f32 0.5, %v5150_v51  ;;  %v2691_v27 = vmul.f32 0.5, %v5173_v18  ;;  %v2693_v25 = vmul.f32 0.5, %v5182_v55  ;;  %v3416_v55 = vld [vmem:[%s5298_s7 + $0x6] ss:$0 sm:$0xff] }
 0xa7f   : > { %3005 = vmatmul.mubr.bf16.gmra.mrb[52].mxu1 %v2824_v54  ;;  %4107 = vtanh.f32 %v2770_v59  ;;  %v2690_v14 = vmul.f32 0.5, %v5168_v53  ;;  %v2692_v32 = vmul.f32 0.5, %v5178_v29 }
 0xa80   : > { %v4096_v36 = vpop.eup %4095  ;;  %4109 = vtanh.f32 %v2772_v56 }
 0xa81   : > { %v4098_v37 = vpop.eup %4097  ;;  %v2799_v17 = vadd.f32 1.0, %v4096_v36 }
 0xa82   : > { %v2801_v58 = vadd.f32 1.0, %v4098_v37 }
 0xa83   : > { %v4100_v49 = vpop.eup %4099  ;;  %v2815_v2 = vmul.f32 %v2799_v17, %v2687_v28 }
 0xa84   : > { %v2817_v44 = vmul.f32 %v2801_v58, %v2689_v33  ;;  %v4102_v1 = vpop.eup %4101  ;;  %v2798_v61 = vadd.f32 1.0, %v4100_v49 }
 0xa85   : > { %v2800_v4 = vadd.f32 1.0, %v4102_v1 }
 0xa86   : > { %v2827_v42 = vpack.c.bf16 %v2817_v44, %v2815_v2  ;;  %v2814_v45 = vmul.f32 %v2798_v61, %v2686_v6 }
 0xa87   : > { %v4104_v35 = vpop.eup %4103  ;;  %v2816_v11 = vmul.f32 %v2800_v4, %v2688_v60 }
 0xa88   : > { %3012 = vmatprep.mubr.bf16.mxu1 %v2827_v42  ;;  %v4106_v39 = vpop.eup %4105  ;;  %v2803_v23 = vadd.f32 1.0, %v4104_v35 }
 0xa89   : > { %v4108_v30 = vpop.eup %4107  ;;  %v2826_v62 = vpack.c.bf16 %v2816_v11, %v2814_v45  ;;  %v2805_v7 = vadd.f32 1.0, %v4106_v39 }
 0xa8a   : > { %v4110_v13 = vpop.eup %4109  ;;  %v2802_v50 = vadd.f32 1.0, %v4108_v30  ;;  %v2819_v51 = vmul.f32 %v2803_v23, %v2691_v27 }
 0xa8b   : > { %3013 = vmatmul.mubr.bf16.gmra.mrb[56].mxu1 %v2826_v62  ;;  %v2821_v0 = vmul.f32 %v2805_v7, %v2693_v25  ;;  %v2804_v15 = vadd.f32 1.0, %v4110_v13 }
 0xa8c   : > { %v2818_v34 = vmul.f32 %v2802_v50, %v2690_v14 }
 0xa8d   : > { %v2829_v20 = vpack.c.bf16 %v2821_v0, %v2819_v51  ;;  %v2820_v24 = vmul.f32 %v2804_v15, %v2692_v32 }
 0xa8f   : > { %3020 = vmatprep.mubr.bf16.mxu1 %v2829_v20  ;;  %v2828_v57 = vpack.c.bf16 %v2820_v24, %v2818_v34 }
 0xa93   : > { %3021 = vmatmul.mubr.bf16.gmra.mrb[60].mxu1 %v2828_v57 }
 0xb4a   : > { %v3555_v18 = vpop.f32.mrb[48].mxu1 }
 0xb4b   : > { %v3556_v43 = vpop.f32.mrb[49].mxu1 }
 0xb4c   : > { %v3557_v53 = vadd.f32 %v3556_v43, %v3555_v18  ;;  %v3558_v12 = vpop.f32.mrb[50].mxu1 }
 0xb4d   : > { %v3559_v41 = vpop.f32.mrb[51].mxu1 }
 0xb4e   : > { %v2999_v26 = vadd.f32 %v3557_v53, %v3416_v55  ;;  %v3560_v63 = vadd.f32 %v3559_v41, %v3558_v12 }
 0xb50   : > { %v3002_v16 = vadd.f32 %v3560_v63, %v3416_v55  ;;  %v3029_v29 = vadd.f32 %v2999_v26, %v5014_v10 }
 0xb52   : > { %3037 = vadd.xlane.f32.xlu1 %v3029_v29  ;;  %v3561_v22 = vpop.f32.mrb[52].mxu1  ;;  %v3030_v8 = vadd.f32 %v3002_v16, %v5016_v48 }
 0xb53   : > { %v3562_v9 = vpop.f32.mrb[53].mxu1 }
 0xb54   : > { %v3563_v31 = vadd.f32 %v3562_v9, %v3561_v22  ;;  %3039 = vadd.xlane.f32.xlu0 %v3030_v8  ;;  %v3564_v40 = vpop.f32.mrb[54].mxu1 }
 0xb55   : > { %v3565_v5 = vpop.f32.mrb[55].mxu1 }
 0xb56   : > { %v3007_v54 = vadd.f32 %v3563_v31, %v3416_v55  ;;  %v3566_v47 = vadd.f32 %v3565_v5, %v3564_v40 }
 0xb58   : > { %v3010_v59 = vadd.f32 %v3566_v47, %v3416_v55  ;;  %v3031_v56 = vadd.f32 %v3007_v54, %v5027_v19 }
 0xb5a   : > { %3041 = vadd.xlane.f32.xlu1 %v3031_v56  ;;  %v3032_v36 = vadd.f32 %v3010_v59, %v5023_v3 }
 0xb5c   : > { %3043 = vadd.xlane.f32.xlu0 %v3032_v36 }
 0xb5e   : > { %v3567_v37 = vpop.f32.mrb[56].mxu1 }
 0xb5f   : > { %v3568_v10 = vpop.f32.mrb[57].mxu1 }
 0xb60   : > { %v3569_v17 = vadd.f32 %v3568_v10, %v3567_v37  ;;  %v3570_v28 = vpop.f32.mrb[58].mxu1  ;;  %v3433_v10 = vld [vmem:[%s5298_s7 + $0x9] ss:$0 sm:$0xff] }
 0xb61   : > { %v3571_v33 = vpop.f32.mrb[59].mxu1 }
 0xb62   : > { %v3015_v48 = vadd.f32 %v3569_v17, %v3416_v55  ;;  %v3572_v58 = vadd.f32 %v3571_v33, %v3570_v28  ;;  %v3434_v33 = vld [vmem:[%s5298_s7 + $0xa] ss:$0 sm:$0xff] }
 0xb64   : > { %v3018_v49 = vadd.f32 %v3572_v58, %v3416_v55  ;;  %v3033_v2 = vadd.f32 %v3015_v48, %v5032_v21 }
 0xb66   : > { %3045 = vadd.xlane.f32.xlu1 %v3033_v2  ;;  %v3573_v44 = vpop.f32.mrb[60].mxu1  ;;  %v3034_v1 = vadd.f32 %v3018_v49, %v5034_v38 }
 0xb67   : > { %v3574_v61 = vpop.f32.mrb[61].mxu1 }
 0xb68   : > { %v3575_v19 = vadd.f32 %v3574_v61, %v3573_v44  ;;  %3047 = vadd.xlane.f32.xlu0 %v3034_v1  ;;  %v3576_v42 = vpop.f32.mrb[62].mxu1 }
 0xb69   : > { %v3577_v3 = vpop.f32.mrb[63].mxu1 }
 0xb6a   : > { %v3023_v6 = vadd.f32 %v3575_v19, %v3416_v55  ;;  %v3578_v60 = vadd.f32 %v3577_v3, %v3576_v42 }
 0xb6c   : > { %v3026_v4 = vadd.f32 %v3578_v60, %v3416_v55  ;;  %v3035_v35 = vadd.f32 %v3023_v6, %v5041_v52 }
 0xb6e   : > { %3049 = vadd.xlane.f32.xlu1 %v3035_v35  ;;  %v3036_v45 = vadd.f32 %v3026_v4, %v5043_v46 }
 0xb70   : > { %3051 = vadd.xlane.f32.xlu0 %v3036_v45 }
 0xbdf   : > { %v3038_v11 = vpop.xlane.xlu1 %3037 }
 0xbe0   : > { %v3053_v21 = vmul.f32 0.0078125, %v3038_v11 }
 0xbe1   : > { %v3040_v39 = vpop.xlane.xlu0 %3039 }
 0xbe2   : > { %v3061_v23 = vsub.f32 %v3029_v29, %v3053_v21  ;;  %v3054_v30 = vmul.f32 0.0078125, %v3040_v39 }
 0xbe4   : > { %v3062_v38 = vsub.f32 %v3030_v8, %v3054_v30  ;;  %v3069_v62 = vmul.f32 %v3061_v23, %v3061_v23 }
 0xbe6   : > { %3077 = vadd.xlane.f32.xlu1 %v3069_v62  ;;  %v3070_v27 = vmul.f32 %v3062_v38, %v3062_v38 }
 0xbe7   : > { %v3042_v25 = vpop.xlane.xlu1 %3041 }
 0xbe8   : > { %v3055_v7 = vmul.f32 0.0078125, %v3042_v25  ;;  %3079 = vadd.xlane.f32.xlu0 %v3070_v27 }
 0xbe9   : > { %v3044_v13 = vpop.xlane.xlu0 %3043 }
 0xbea   : > { %v3063_v14 = vsub.f32 %v3031_v56, %v3055_v7  ;;  %v3056_v50 = vmul.f32 0.0078125, %v3044_v13 }
 0xbec   : > { %v5224_v52 = vsub.f32 %v3032_v36, %v3056_v50  ;;  %v3071_v51 = vmul.f32 %v3063_v14, %v3063_v14 }
 0xbee   : > { %3081 = vadd.xlane.f32.xlu1 %v3071_v51  ;;  %v3072_v46 = vmul.f32 %v5224_v52, %v5224_v52 }
 0xbf0   : > { %3083 = vadd.xlane.f32.xlu0 %v3072_v46 }
 0xbf3   : > { %v3046_v0 = vpop.xlane.xlu1 %3045 }
 0xbf4   : > { %v3057_v32 = vmul.f32 0.0078125, %v3046_v0 }
 0xbf5   : > { %v3048_v15 = vpop.xlane.xlu0 %3047 }
 0xbf6   : > { %v5228_v20 = vsub.f32 %v3033_v2, %v3057_v32  ;;  %v3058_v34 = vmul.f32 0.0078125, %v3048_v15 }
 0xbf8   : > { %v5230_v24 = vsub.f32 %v3034_v1, %v3058_v34  ;;  %v3073_v57 = vmul.f32 %v5228_v20, %v5228_v20 }
 0xbfa   : > { %3085 = vadd.xlane.f32.xlu1 %v3073_v57  ;;  %v3074_v18 = vmul.f32 %v5230_v24, %v5230_v24 }
 0xbfb   : > { %v3050_v55 = vpop.xlane.xlu1 %3049 }
 0xbfc   : > { %v3059_v43 = vmul.f32 0.0078125, %v3050_v55  ;;  %3087 = vadd.xlane.f32.xlu0 %v3074_v18 }
 0xbfd   : > { %v3052_v53 = vpop.xlane.xlu0 %3051 }
 0xbfe   : > { %v5236_v12 = vsub.f32 %v3035_v35, %v3059_v43  ;;  %v3060_v41 = vmul.f32 0.0078125, %v3052_v53 }
 0xc00   : > { %v5238_v26 = vsub.f32 %v3036_v45, %v3060_v41  ;;  %v3075_v63 = vmul.f32 %v5236_v12, %v5236_v12 }
 0xc02   : > { %3089 = vadd.xlane.f32.xlu1 %v3075_v63  ;;  %v3076_v16 = vmul.f32 %v5238_v26, %v5238_v26 }
 0xc04   : > { %3091 = vadd.xlane.f32.xlu0 %v3076_v16 }
 0xc73   : > { %v3078_v29 = vpop.xlane.xlu1 %3077 }
 0xc74   : > { %v3093_v22 = vmul.f32 0.0078125, %v3078_v29 }
 0xc75   : > { %v3080_v8 = vpop.xlane.xlu0 %3079 }
 0xc76   : > { %v3101_v9 = vadd.f32 1e-05, %v3093_v22  ;;  %v3094_v31 = vmul.f32 0.0078125, %v3080_v8 }
 0xc78   : > { %4111 = vrsqrt.f32 %v3101_v9  ;;  %v3102_v40 = vadd.f32 1e-05, %v3094_v31 }
 0xc7a   : > { %4113 = vrsqrt.f32 %v3102_v40 }
 0xc7b   : > { %v3082_v5 = vpop.xlane.xlu1 %3081 }
 0xc7c   : > { %v3095_v54 = vmul.f32 0.0078125, %v3082_v5 }
 0xc7d   : > { %v3084_v47 = vpop.xlane.xlu0 %3083 }
 0xc7e   : > { %v3103_v59 = vadd.f32 1e-05, %v3095_v54  ;;  %v3096_v56 = vmul.f32 0.0078125, %v3084_v47 }
 0xc80   : > { %4115 = vrsqrt.f32 %v3103_v59  ;;  %v3104_v36 = vadd.f32 1e-05, %v3096_v56 }
 0xc82   : > { %v4112_v37 = vpop.eup %4111  ;;  %4117 = vrsqrt.f32 %v3104_v36 }
 0xc83   : > { %v3117_v17 = vmul.f32 %v4112_v37, %v3061_v23 }
 0xc84   : > { %v4114_v28 = vpop.eup %4113 }
 0xc85   : > { %v3131_v48 = vmul.f32 %v3433_v10, %v3117_v17  ;;  %v3118_v58 = vmul.f32 %v4114_v28, %v3062_v38 }
 0xc87   : > { %v3145_v49 = vadd.f32 %v3434_v33, %v3131_v48  ;;  %v3132_v2 = vmul.f32 %v3433_v10, %v3118_v58  ;;  %v3086_v44 = vpop.xlane.xlu1 %3085 }
 0xc88   : > { %v3097_v61 = vmul.f32 0.0078125, %v3086_v44 }
 0xc89   : > { %3153 = vst [vmem:[%s5251_s20] sm:$0xff] %v3145_v49  ;;  %v3146_v1 = vadd.f32 %v3434_v33, %v3132_v2  ;;  %v3088_v42 = vpop.xlane.xlu0 %3087 }
 0xc8a   : > { %v4116_v19 = vpop.eup %4115  ;;  %v3105_v6 = vadd.f32 1e-05, %v3097_v61  ;;  %v3098_v60 = vmul.f32 0.0078125, %v3088_v42 }
 0xc8b   : > { %3154 = vst [vmem:[%s5251_s20 + $0x8] sm:$0xff] %v3146_v1  ;;  %v3119_v3 = vmul.f32 %v4116_v19, %v3063_v14 }
 0xc8c   : > { %v4118_v4 = vpop.eup %4117  ;;  %4119 = vrsqrt.f32 %v3105_v6  ;;  %v3106_v11 = vadd.f32 1e-05, %v3098_v60 }
 0xc8d   : > { %v3133_v35 = vmul.f32 %v3433_v10, %v3119_v3  ;;  %v3120_v45 = vmul.f32 %v4118_v4, %v5224_v52 }
 0xc8e   : > { %4121 = vrsqrt.f32 %v3106_v11 }
 0xc8f   : > { %v3147_v21 = vadd.f32 %v3434_v33, %v3133_v35  ;;  %v3134_v39 = vmul.f32 %v3433_v10, %v3120_v45  ;;  %v3090_v23 = vpop.xlane.xlu1 %3089 }
 0xc90   : > { %v3099_v38 = vmul.f32 0.0078125, %v3090_v23 }
 0xc91   : > { %3155 = vst [vmem:[%s5251_s20 + $0x10] sm:$0xff] %v3147_v21  ;;  %v3148_v30 = vadd.f32 %v3434_v33, %v3134_v39  ;;  %v3092_v62 = vpop.xlane.xlu0 %3091 }
 0xc92   : > { %v3107_v27 = vadd.f32 1e-05, %v3099_v38  ;;  %v3100_v25 = vmul.f32 0.0078125, %v3092_v62 }
 0xc93   : > { %3156 = vst [vmem:[%s5251_s20 + $0x18] sm:$0xff] %v3148_v30 }
 0xc94   : > { %4123 = vrsqrt.f32 %v3107_v27  ;;  %v3108_v7 = vadd.f32 1e-05, %v3100_v25 }
 0xc96   : > { %v4120_v13 = vpop.eup %4119  ;;  %4125 = vrsqrt.f32 %v3108_v7 }
 0xc97   : > { %v3121_v14 = vmul.f32 %v4120_v13, %v5228_v20 }
 0xc98   : > { %v4122_v50 = vpop.eup %4121  ;;  %v3215_v41 = vld [vmem:[%s5251_s20 + $0x10] sm:$0xff] (%p4242_p5) }
 0xc99   : > { %v3135_v52 = vmul.f32 %v3433_v10, %v3121_v14  ;;  %v3122_v51 = vmul.f32 %v4122_v50, %v5230_v24  ;;  %v3211_v24 = vld [vmem:[%s5251_s20] sm:$0xff] (%p4242_p5)  ;;  %3216 = vst [vmem:[%s3169_s23 + $0x20] sm:$0xff] (%p4242_p5), %v3215_v41 }
 0xc9a   : > { %3212 = vst [vmem:[%s3169_s23] sm:$0xff] (%p4242_p5), %v3211_v24 }
 0xc9b   : > { %v3149_v46 = vadd.f32 %v3434_v33, %v3135_v52  ;;  %v3136_v0 = vmul.f32 %v3433_v10, %v3122_v51 }
 0xc9d   : > { %3157 = vst [vmem:[%s5251_s20 + $0x20] sm:$0xff] %v3149_v46  ;;  %v3150_v32 = vadd.f32 %v3434_v33, %v3136_v0 }
 0xc9e   : > { %v4124_v15 = vpop.eup %4123 }
 0xc9f   : > { %3158 = vst [vmem:[%s5251_s20 + $0x28] sm:$0xff] %v3150_v32  ;;  %v3123_v34 = vmul.f32 %v4124_v15, %v5236_v12  ;;  %v3213_v12 = vld [vmem:[%s5251_s20 + $0x8] sm:$0xff] (%p4242_p5) }
 0xca0   : > { %v4126_v57 = vpop.eup %4125  ;;  %3214 = vst [vmem:[%s3169_s23 + $0x10] sm:$0xff] (%p4242_p5), %v3213_v12 }
 0xca1   : > { %v3137_v18 = vmul.f32 %v3433_v10, %v3123_v34  ;;  %v3124_v55 = vmul.f32 %v4126_v57, %v5238_v26  ;;  %3167 = sbr.rel (!%p4242_p5) target bundleno = 3248 (0xcb0), region = 132  ;;  %v3217_v26 = vld [vmem:[%s5251_s20 + $0x18] sm:$0xff] (%p4242_p5) }
 0xca2   : > { %3218 = vst [vmem:[%s3169_s23 + $0x30] sm:$0xff] (%p4242_p5), %v3217_v26 }
 0xca3   : > { %v3151_v43 = vadd.f32 %v3434_v33, %v3137_v18  ;;  %v3138_v20 = vmul.f32 %v3433_v10, %v3124_v55 }
 0xca4   : > { %v3219_v63 = vld [vmem:[%s5251_s20 + $0x20] sm:$0xff] (%p4242_p5) }
 0xca5   : > { %3159 = vst [vmem:[%s5251_s20 + $0x30] sm:$0xff] %v3151_v43  ;;  %v3152_v53 = vadd.f32 %v3434_v33, %v3138_v20  ;;  %3220 = vst [vmem:[%s3169_s23 + $0x40] sm:$0xff] (%p4242_p5), %v3219_v63 }
 0xca6   : > { %v3221_v16 = vld [vmem:[%s5251_s20 + $0x28] sm:$0xff] (%p4242_p5) }
 0xca7   : > { %3160 = vst [vmem:[%s5251_s20 + $0x38] sm:$0xff] %v3152_v53  ;;  %3222 = vst [vmem:[%s3169_s23 + $0x50] sm:$0xff] (%p4242_p5), %v3221_v16 }
 0xcac   : > { %v3223_v29 = vld [vmem:[%s5251_s20 + $0x30] sm:$0xff] }
 0xcad   : > { %3224 = vst [vmem:[%s3169_s23 + $0x60] sm:$0xff] %v3223_v29 }
 0xcae   : > { %v3225_v22 = vld [vmem:[%s5251_s20 + $0x38] sm:$0xff] }
 0xcaf   : > { %3226 = vst [vmem:[%s3169_s23 + $0x70] sm:$0xff] %v3225_v22 }
 0xcb0 PF: > { %p15_p10 = scmp.ge.s32.totalorder %s4225_s9, 4   ;;  %s5302_s27 = smov %s4153_s28 }
 0xcb1   : > { %s5303_s28 = smov %s4236_s12  ;;  %s5304_s29 = smov %s4225_s9 }
 0xcb2   :  { %17 = sbr.rel (!%p15_p10) target bundleno = 2 (0x2), region = 209 }

</bundles_post_ra>
